<compile_context>
chip_gen: v7x
topology: tpu7x:2x2x1
jax: 0.10.0
libtpu: 0.0.40
codegen_flags: <defaults>
</compile_context>

<pallas_src>
import numpy as np
import jax
import jax.numpy as jnp
from jax import lax
from jax.experimental import pallas as pl
from jax.experimental.pallas import tpu as pltpu


# ----------------------------- fused forward kernel ------------------------

def _lenet_fused_kernel(x_ref, band1_ref, b1_ref, band2_ref, b2_ref,
                        w3_ref, b3_ref, w4_ref, b4_ref, o_ref,
                        rm_ref, p1_ref, feat_ref):
    """Whole forward pass for ONE sample (the grid iterates over the batch).

    Layouts (all f32, channels kept on the lane / minor axis):
      x_ref     (1,1,28,28)  input image (NCHW block)
      band1_ref (5,28,240)   conv1 as banded matmul:  [ki, w, ow*10+co]
      b1_ref    (1,240)      conv1 bias tiled over ow
      band2_ref (5,120,160)  conv2 as banded matmul:  [ki, pw*10+ci, ow*20+co]
      b2_ref    (1,160)      conv2 bias tiled over ow
      w3_ref    (320,50)     fc1 weights, rows ordered (h, w, c)
      w4_ref    (50,10)      fc2 weights
      o_ref     (1,1,10)     output log-probabilities
      rm_ref    (12,240)     scratch: conv1 rows after 2:1 row max
      p1_ref    (12,120)     scratch: pool1 output  [ph, pw*10+ci]
      feat_ref  (1,320)      scratch: flattened pool2 output ((h,w,c) order)
    """
    f32 = jnp.float32
    x = x_ref[0, 0, :, :]                                 # (28, 28)

    # ---- conv1 (1->10, k=5, valid): 5 banded (24,28)@(28,240) matmuls ------
    y1 = jnp.zeros((24, 240), f32)                        # [oh, ow*10+co]
    for ki in range(5):
        y1 = y1 + jnp.dot(x[ki:ki + 24, :], band1_ref[ki],
                          preferred_element_type=f32)
    y1 = y1 + b1_ref[...]

    # ---- maxpool 2x2 + ReLU -> p1[ph, pw*10+ci] ----------------------------
    for p in range(12):                                   # 2:1 max over rows
        rm_ref[p:p + 1, :] = jnp.maximum(y1[2 * p:2 * p + 1, :],
                                         y1[2 * p + 1:2 * p + 2, :])
    rm = rm_ref[...]                                      # (12, 240)
    for pw in range(12):                                  # 2:1 max over ow
        m = jnp.maximum(rm[:, 20 * pw:20 * pw + 10],
                        rm[:, 20 * pw + 10:20 * pw + 20])
        p1_ref[:, 10 * pw:10 * pw + 10] = jnp.maximum(m, 0.0)

    # ---- conv2 (10->20, k=5, valid): 5 banded (8,120)@(120,160) matmuls ----
    # TODO(synk): nn.Dropout2d(p=0.5) is stochastic in training mode; treated
    # as identity here (eval/inference semantics).
    y2 = jnp.zeros((8, 160), f32)                         # [oh, ow*20+co]
    for ki in range(5):
        y2 = y2 + jnp.dot(p1_ref[ki:ki + 8, :], band2_ref[ki],
                          preferred_element_type=f32)
    y2 = y2 + b2_ref[...]

    # ---- maxpool 2x2 + ReLU + flatten ((h,w,c) order) -> feat (1, 320) -----
    for r in range(16):
        ph, pw = divmod(r, 4)
        ra, rb = 2 * ph, 2 * ph + 1
        ca, cb = 40 * pw, 40 * pw + 20
        v = jnp.maximum(
            jnp.maximum(y2[ra:ra + 1, ca:ca + 20], y2[ra:ra + 1, cb:cb + 20]),
            jnp.maximum(y2[rb:rb + 1, ca:ca + 20], y2[rb:rb + 1, cb:cb + 20]))
        feat_ref[:, 20 * r:20 * r + 20] = jnp.maximum(v, 0.0)

    # ---- fc1 + ReLU, fc2, log_softmax (fused epilogue) ---------------------
    feat = feat_ref[...]                                  # (1, 320)
    h = jnp.maximum(jnp.dot(feat, w3_ref[...], preferred_element_type=f32)
                    + b3_ref[...], 0.0)                   # (1, 50)
    logits = jnp.dot(h, w4_ref[...], preferred_element_type=f32) + b4_ref[...]
    mx = jnp.max(logits, axis=-1, keepdims=True)
    z = logits - mx
    lse = jnp.log(jnp.sum(jnp.exp(z), axis=-1, keepdims=True))
    o_ref[0] = z - lse                                    # (1, 10) log-probs


def forward(kp, x):
    """x: (N, 1, 28, 28) float32 (PyTorch NCHW) -> (N, 10) log-probabilities."""
    n = x.shape[0]
    # NOTE: for a real (large) batch, tile the batch axis >1 per grid step and
    # cast the matmul operands to bf16 on v6e/v7x; at N=2 f32 + 1 sample/step
    # is latency-optimal.
    out = pl.pallas_call(
        _lenet_fused_kernel,
        out_shape=jax.ShapeDtypeStruct((n, 1, 10), jnp.float32),
        grid=(n,),
        in_specs=[
            pl.BlockSpec((1, 1, 28, 28), lambda i: (i, 0, 0, 0)),
            pl.BlockSpec((5, 28, 240), lambda i: (0, 0, 0)),
            pl.BlockSpec((1, 240), lambda i: (0, 0)),
            pl.BlockSpec((5, 120, 160), lambda i: (0, 0, 0)),
            pl.BlockSpec((1, 160), lambda i: (0, 0)),
            pl.BlockSpec((320, 50), lambda i: (0, 0)),
            pl.BlockSpec((1, 50), lambda i: (0, 0)),
            pl.BlockSpec((50, 10), lambda i: (0, 0)),
            pl.BlockSpec((1, 10), lambda i: (0, 0)),
        ],
        out_specs=pl.BlockSpec((1, 1, 10), lambda i: (i, 0, 0)),
        scratch_shapes=[
            pltpu.VMEM((12, 240), jnp.float32),   # rm   (row-pooled conv1)
            pltpu.VMEM((12, 120), jnp.float32),   # p1   (pool1 output)
            pltpu.VMEM((1, 320), jnp.float32),    # feat (flattened pool2)
        ],
        compiler_params=pltpu.CompilerParams(
            dimension_semantics=("parallel",)),
    )(x, kp["band1"], kp["b1"], kp["band2"], kp["b2"],
      kp["w3"], kp["b3"], kp["w4"], kp["b4"])
    return out.reshape(n, 10)


# ------------------------------ parameters ---------------------------------

def init_torch_layout_params(key):
    """Random params in PyTorch's native layouts (Conv2d: (Cout,Cin,kh,kw),
    Linear: (out,in))."""
    ks = jax.random.split(key, 8)

    def rnd(k, shape, fan_in):
        return jax.random.normal(k, shape, jnp.float32) / jnp.sqrt(fan_in)

    return {
        "conv1_w": rnd(ks[0], (10, 1, 5, 5), 25.0),
        "conv1_b": rnd(ks[1], (10,), 25.0),
        "conv2_w": rnd(ks[2], (20, 10, 5, 5), 250.0),
        "conv2_b": rnd(ks[3], (20,), 250.0),
        "fc1_w": rnd(ks[4], (50, 320), 320.0),
        "fc1_b": rnd(ks[5], (50,), 320.0),
        "fc2_w": rnd(ks[6], (10, 50), 50.0),
        "fc2_b": rnd(ks[7], (10,), 50.0),
    }


def prepare_kernel_params(tp):
    """One-time (init) conversion of PyTorch-layout weights into the layouts
    the fused kernel consumes: banded conv matrices, biases pre-tiled over the
    output-width axis, fc1 rows reordered (c,h,w)->(h,w,c).  Runs once on the
    host with numpy; nothing here executes per forward call."""
    # conv1 taps (ki, kj, co); banded matrix B1[ki, w, ow*10+co] = taps[ki, w-ow, co]
    w1t = np.asarray(jnp.transpose(tp["conv1_w"], (2, 3, 1, 0))).reshape(5, 5, 10)
    band1 = np.zeros((5, 28, 24, 10), np.float32)
    for ki in range(5):
        for kj in range(5):
            for ow in range(24):
                band1[ki, ow + kj, ow, :] = w1t[ki, kj]
    band1 = band1.reshape(5, 28, 240)

    # conv2 taps (ki, kj, ci, co); banded matrix B2[ki, pw*10+ci, ow*20+co]
    w2t = np.asarray(jnp.transpose(tp["conv2_w"], (2, 3, 1, 0)))     # (5,5,10,20)
    band2 = np.zeros((5, 12, 10, 8, 20), np.float32)
    for ki in range(5):
        for kj in range(5):
            for ow in range(8):
                band2[ki, ow + kj, :, ow, :] = w2t[ki, kj]
    band2 = band2.reshape(5, 120, 160)

    b1 = np.tile(np.asarray(tp["conv1_b"]), 24).reshape(1, 240)
    b2 = np.tile(np.asarray(tp["conv2_b"]), 8).reshape(1, 160)

    # fc1: PyTorch flattens NCHW -> (c, h, w); the kernel flattens (h, w, c).
    w3 = np.asarray(jnp.transpose(tp["fc1_w"].reshape(50, 20, 4, 4),
                                  (2, 3, 1, 0))).reshape(320, 50)
    b3 = np.asarray(tp["fc1_b"]).reshape(1, 50)
    w4 = np.asarray(jnp.transpose(tp["fc2_w"]))                      # (50, 10)
    b4 = np.asarray(tp["fc2_b"]).reshape(1, 10)

    raw = dict(band1=band1, b1=b1, band2=band2, b2=b2,
               w3=w3, b3=b3, w4=w4, b4=b4)
    return {k: jnp.asarray(v, jnp.float32) for k, v in raw.items()}


# ---------------------------- pure-JAX reference ----------------------------

def _maxpool2_ref(y):                       # (N, C, H, W) -> (N, C, H/2, W/2)
    n, c, h, w = y.shape
    return jnp.max(y.reshape(n, c, h // 2, 2, w // 2, 2), axis=(3, 5))


def reference_forward(tp, x):
    """Plain XLA reference of the PyTorch module (eval mode)."""
    dn = ("NCHW", "OIHW", "NCHW")
    y = lax.conv_general_dilated(x, tp["conv1_w"], (1, 1), "VALID",
                                 dimension_numbers=dn)
    y = y + tp["conv1_b"][None, :, None, None]
    y = jnp.maximum(_maxpool2_ref(y), 0.0)
    y = lax.conv_general_dilated(y, tp["conv2_w"], (1, 1), "VALID",
                                 dimension_numbers=dn)
    y = y + tp["conv2_b"][None, :, None, None]
    y = jnp.maximum(_maxpool2_ref(y), 0.0)          # Dropout2d == identity (eval)
    f = y.reshape(y.shape[0], -1)                   # (N, 320), (c, h, w) order
    h = jnp.maximum(f @ tp["fc1_w"].T + tp["fc1_b"], 0.0)
    logits = h @ tp["fc2_w"].T + tp["fc2_b"]
    return jax.nn.log_softmax(logits, axis=1)


# ----------------------------------- main -----------------------------------

if __name__ == "__main__":
    key = jax.random.PRNGKey(0)
    pkey, xkey = jax.random.split(key)

    torch_params = init_torch_layout_params(pkey)
    kernel_params = prepare_kernel_params(torch_params)

    # Module implies 28x28 single-channel input (Linear(320) = 20*4*4).
    x = jax.random.normal(xkey, (2, 1, 28, 28), jnp.float32)

    out = jax.block_until_ready(jax.jit(forward)(kernel_params, x))

    assert out.shape == (2, 10), out.shape
    # rows are log-probabilities
    assert jnp.allclose(jnp.sum(jnp.exp(out), axis=1), 1.0, atol=1e-4)
    # cross-check the fused Pallas kernel against the plain XLA reference
    ref = reference_forward(torch_params, x)
    assert jnp.allclose(out, ref, atol=5e-2, rtol=5e-2), \
        float(jnp.max(jnp.abs(out - ref)))
    print("KERNEL_OK")
</pallas_src>

<mosaic_0001>
module attributes {stable_mosaic.version = 11 : i64} {
  func.func @_lenet_fused_kernel(%arg0: i32, %arg1: memref<1x1x28x28xf32, #tpu.memory_space<vmem>>, %arg2: memref<5x28x240xf32, #tpu.memory_space<vmem>>, %arg3: memref<1x240xf32, #tpu.memory_space<vmem>>, %arg4: memref<5x120x160xf32, #tpu.memory_space<vmem>>, %arg5: memref<1x160xf32, #tpu.memory_space<vmem>>, %arg6: memref<320x50xf32, #tpu.memory_space<vmem>>, %arg7: memref<1x50xf32, #tpu.memory_space<vmem>>, %arg8: memref<50x10xf32, #tpu.memory_space<vmem>>, %arg9: memref<1x10xf32, #tpu.memory_space<vmem>>, %arg10: memref<1x1x10xf32, #tpu.memory_space<vmem>>, %arg11: memref<12x240xf32, #tpu.memory_space<vmem>>, %arg12: memref<12x120xf32, #tpu.memory_space<vmem>>, %arg13: memref<1x320xf32, #tpu.memory_space<vmem>>) attributes {dimension_semantics = [#tpu.dimension_semantics<parallel>], iteration_bounds = array<i64: 2>, scalar_prefetch = 0 : i64, scratch_operands = 3 : i64, tpu.core_type = #tpu.core_type<tc>, window_params = [{transform_indices = @transform_0, window_bounds = array<i64: 1, 1, 28, 28>}, {pipeline_mode = #tpu.pipeline_mode<synchronous>, transform_indices = @transform_1, window_bounds = array<i64: 5, 28, 240>}, {pipeline_mode = #tpu.pipeline_mode<synchronous>, transform_indices = @transform_2, window_bounds = array<i64: 1, 240>}, {pipeline_mode = #tpu.pipeline_mode<synchronous>, transform_indices = @transform_3, window_bounds = array<i64: 5, 120, 160>}, {pipeline_mode = #tpu.pipeline_mode<synchronous>, transform_indices = @transform_4, window_bounds = array<i64: 1, 160>}, {pipeline_mode = #tpu.pipeline_mode<synchronous>, transform_indices = @transform_5, window_bounds = array<i64: 320, 50>}, {pipeline_mode = #tpu.pipeline_mode<synchronous>, transform_indices = @transform_6, window_bounds = array<i64: 1, 50>}, {pipeline_mode = #tpu.pipeline_mode<synchronous>, transform_indices = @transform_7, window_bounds = array<i64: 50, 10>}, {pipeline_mode = #tpu.pipeline_mode<synchronous>, transform_indices = @transform_8, window_bounds = array<i64: 1, 10>}, {transform_indices = @transform_9, window_bounds = array<i64: 1, 1, 10>}]} {
    %c0 = arith.constant 0 : index
    %c0_0 = arith.constant 0 : index
    %c0_1 = arith.constant 0 : index
    %c0_2 = arith.constant 0 : index
    %0 = vector.load %arg1[%c0, %c0_0, %c0_1, %c0_2] : memref<1x1x28x28xf32, #tpu.memory_space<vmem>>, vector<1x1x28x28xf32>
    %1 = vector.shape_cast %0 : vector<1x1x28x28xf32> to vector<28x28xf32>
    %cst = arith.constant 0.000000e+00 : f32
    %2 = vector.broadcast %cst : f32 to vector<24x240xf32>
    %3 = vector.extract_strided_slice %1 {offsets = [0, 0], sizes = [24, 28], strides = [1, 1]} : vector<28x28xf32> to vector<24x28xf32>
    %c0_3 = arith.constant 0 : index
    %c0_4 = arith.constant 0 : index
    %c0_5 = arith.constant 0 : index
    %4 = vector.load %arg2[%c0_3, %c0_4, %c0_5] : memref<5x28x240xf32, #tpu.memory_space<vmem>>, vector<1x28x240xf32>
    %5 = vector.shape_cast %4 : vector<1x28x240xf32> to vector<28x240xf32>
    %cst_6 = arith.constant dense<0.000000e+00> : vector<24x240xf32>
    %6 = tpu.matmul %3, %5, %cst_6 {dimension_numbers = #tpu.dot_dimension_numbers<[1], [0], [0], [1], [0, 0, 1, 1], [], []>} : vector<24x28xf32>, vector<28x240xf32>, vector<24x240xf32> -> vector<24x240xf32>
    %7 = arith.addf %2, %6 : vector<24x240xf32>
    %8 = vector.extract_strided_slice %1 {offsets = [1, 0], sizes = [24, 28], strides = [1, 1]} : vector<28x28xf32> to vector<24x28xf32>
    %c1 = arith.constant 1 : index
    %c0_7 = arith.constant 0 : index
    %c0_8 = arith.constant 0 : index
    %9 = vector.load %arg2[%c1, %c0_7, %c0_8] : memref<5x28x240xf32, #tpu.memory_space<vmem>>, vector<1x28x240xf32>
    %10 = vector.shape_cast %9 : vector<1x28x240xf32> to vector<28x240xf32>
    %cst_9 = arith.constant dense<0.000000e+00> : vector<24x240xf32>
    %11 = tpu.matmul %8, %10, %cst_9 {dimension_numbers = #tpu.dot_dimension_numbers<[1], [0], [0], [1], [0, 0, 1, 1], [], []>} : vector<24x28xf32>, vector<28x240xf32>, vector<24x240xf32> -> vector<24x240xf32>
    %12 = arith.addf %7, %11 : vector<24x240xf32>
    %13 = vector.extract_strided_slice %1 {offsets = [2, 0], sizes = [24, 28], strides = [1, 1]} : vector<28x28xf32> to vector<24x28xf32>
    %c2 = arith.constant 2 : index
    %c0_10 = arith.constant 0 : index
    %c0_11 = arith.constant 0 : index
    %14 = vector.load %arg2[%c2, %c0_10, %c0_11] : memref<5x28x240xf32, #tpu.memory_space<vmem>>, vector<1x28x240xf32>
    %15 = vector.shape_cast %14 : vector<1x28x240xf32> to vector<28x240xf32>
    %cst_12 = arith.constant dense<0.000000e+00> : vector<24x240xf32>
    %16 = tpu.matmul %13, %15, %cst_12 {dimension_numbers = #tpu.dot_dimension_numbers<[1], [0], [0], [1], [0, 0, 1, 1], [], []>} : vector<24x28xf32>, vector<28x240xf32>, vector<24x240xf32> -> vector<24x240xf32>
    %17 = arith.addf %12, %16 : vector<24x240xf32>
    %18 = vector.extract_strided_slice %1 {offsets = [3, 0], sizes = [24, 28], strides = [1, 1]} : vector<28x28xf32> to vector<24x28xf32>
    %c3 = arith.constant 3 : index
    %c0_13 = arith.constant 0 : index
    %c0_14 = arith.constant 0 : index
    %19 = vector.load %arg2[%c3, %c0_13, %c0_14] : memref<5x28x240xf32, #tpu.memory_space<vmem>>, vector<1x28x240xf32>
    %20 = vector.shape_cast %19 : vector<1x28x240xf32> to vector<28x240xf32>
    %cst_15 = arith.constant dense<0.000000e+00> : vector<24x240xf32>
    %21 = tpu.matmul %18, %20, %cst_15 {dimension_numbers = #tpu.dot_dimension_numbers<[1], [0], [0], [1], [0, 0, 1, 1], [], []>} : vector<24x28xf32>, vector<28x240xf32>, vector<24x240xf32> -> vector<24x240xf32>
    %22 = arith.addf %17, %21 : vector<24x240xf32>
    %23 = vector.extract_strided_slice %1 {offsets = [4, 0], sizes = [24, 28], strides = [1, 1]} : vector<28x28xf32> to vector<24x28xf32>
    %c4 = arith.constant 4 : index
    %c0_16 = arith.constant 0 : index
    %c0_17 = arith.constant 0 : index
    %24 = vector.load %arg2[%c4, %c0_16, %c0_17] : memref<5x28x240xf32, #tpu.memory_space<vmem>>, vector<1x28x240xf32>
    %25 = vector.shape_cast %24 : vector<1x28x240xf32> to vector<28x240xf32>
    %cst_18 = arith.constant dense<0.000000e+00> : vector<24x240xf32>
    %26 = tpu.matmul %23, %25, %cst_18 {dimension_numbers = #tpu.dot_dimension_numbers<[1], [0], [0], [1], [0, 0, 1, 1], [], []>} : vector<24x28xf32>, vector<28x240xf32>, vector<24x240xf32> -> vector<24x240xf32>
    %27 = arith.addf %22, %26 : vector<24x240xf32>
    %c0_19 = arith.constant 0 : index
    %c0_20 = arith.constant 0 : index
    %28 = vector.load %arg3[%c0_19, %c0_20] : memref<1x240xf32, #tpu.memory_space<vmem>>, vector<1x240xf32>
    %29 = vector.broadcast %28 : vector<1x240xf32> to vector<24x240xf32>
    %30 = arith.addf %27, %29 : vector<24x240xf32>
    %31 = vector.extract_strided_slice %30 {offsets = [0, 0], sizes = [1, 240], strides = [1, 1]} : vector<24x240xf32> to vector<1x240xf32>
    %32 = vector.extract_strided_slice %30 {offsets = [1, 0], sizes = [1, 240], strides = [1, 1]} : vector<24x240xf32> to vector<1x240xf32>
    %33 = arith.maximumf %31, %32 : vector<1x240xf32>
    %c0_21 = arith.constant 0 : index
    %c0_22 = arith.constant 0 : index
    %34 = vector.load %arg11[%c0_21, %c0_22] : memref<12x240xf32, #tpu.memory_space<vmem>>, vector<1x240xf32>
    tpu.vector_store %arg11[%c0_21, %c0_22], %33 {strides = array<i32>} : memref<12x240xf32, #tpu.memory_space<vmem>>, vector<1x240xf32>,
    %35 = vector.extract_strided_slice %30 {offsets = [2, 0], sizes = [1, 240], strides = [1, 1]} : vector<24x240xf32> to vector<1x240xf32>
    %36 = vector.extract_strided_slice %30 {offsets = [3, 0], sizes = [1, 240], strides = [1, 1]} : vector<24x240xf32> to vector<1x240xf32>
    %37 = arith.maximumf %35, %36 : vector<1x240xf32>
    %c1_23 = arith.constant 1 : index
    %c0_24 = arith.constant 0 : index
    %38 = vector.load %arg11[%c1_23, %c0_24] : memref<12x240xf32, #tpu.memory_space<vmem>>, vector<1x240xf32>
    tpu.vector_store %arg11[%c1_23, %c0_24], %37 {strides = array<i32>} : memref<12x240xf32, #tpu.memory_space<vmem>>, vector<1x240xf32>,
    %39 = vector.extract_strided_slice %30 {offsets = [4, 0], sizes = [1, 240], strides = [1, 1]} : vector<24x240xf32> to vector<1x240xf32>
    %40 = vector.extract_strided_slice %30 {offsets = [5, 0], sizes = [1, 240], strides = [1, 1]} : vector<24x240xf32> to vector<1x240xf32>
    %41 = arith.maximumf %39, %40 : vector<1x240xf32>
    %c2_25 = arith.constant 2 : index
    %c0_26 = arith.constant 0 : index
    %42 = vector.load %arg11[%c2_25, %c0_26] : memref<12x240xf32, #tpu.memory_space<vmem>>, vector<1x240xf32>
    tpu.vector_store %arg11[%c2_25, %c0_26], %41 {strides = array<i32>} : memref<12x240xf32, #tpu.memory_space<vmem>>, vector<1x240xf32>,
    %43 = vector.extract_strided_slice %30 {offsets = [6, 0], sizes = [1, 240], strides = [1, 1]} : vector<24x240xf32> to vector<1x240xf32>
    %44 = vector.extract_strided_slice %30 {offsets = [7, 0], sizes = [1, 240], strides = [1, 1]} : vector<24x240xf32> to vector<1x240xf32>
    %45 = arith.maximumf %43, %44 : vector<1x240xf32>
    %c3_27 = arith.constant 3 : index
    %c0_28 = arith.constant 0 : index
    %46 = vector.load %arg11[%c3_27, %c0_28] : memref<12x240xf32, #tpu.memory_space<vmem>>, vector<1x240xf32>
    tpu.vector_store %arg11[%c3_27, %c0_28], %45 {strides = array<i32>} : memref<12x240xf32, #tpu.memory_space<vmem>>, vector<1x240xf32>,
    %47 = vector.extract_strided_slice %30 {offsets = [8, 0], sizes = [1, 240], strides = [1, 1]} : vector<24x240xf32> to vector<1x240xf32>
    %48 = vector.extract_strided_slice %30 {offsets = [9, 0], sizes = [1, 240], strides = [1, 1]} : vector<24x240xf32> to vector<1x240xf32>
    %49 = arith.maximumf %47, %48 : vector<1x240xf32>
    %c4_29 = arith.constant 4 : index
    %c0_30 = arith.constant 0 : index
    %50 = vector.load %arg11[%c4_29, %c0_30] : memref<12x240xf32, #tpu.memory_space<vmem>>, vector<1x240xf32>
    tpu.vector_store %arg11[%c4_29, %c0_30], %49 {strides = array<i32>} : memref<12x240xf32, #tpu.memory_space<vmem>>, vector<1x240xf32>,
    %51 = vector.extract_strided_slice %30 {offsets = [10, 0], sizes = [1, 240], strides = [1, 1]} : vector<24x240xf32> to vector<1x240xf32>
    %52 = vector.extract_strided_slice %30 {offsets = [11, 0], sizes = [1, 240], strides = [1, 1]} : vector<24x240xf32> to vector<1x240xf32>
    %53 = arith.maximumf %51, %52 : vector<1x240xf32>
    %c5 = arith.constant 5 : index
    %c0_31 = arith.constant 0 : index
    %54 = vector.load %arg11[%c5, %c0_31] : memref<12x240xf32, #tpu.memory_space<vmem>>, vector<1x240xf32>
    tpu.vector_store %arg11[%c5, %c0_31], %53 {strides = array<i32>} : memref<12x240xf32, #tpu.memory_space<vmem>>, vector<1x240xf32>,
    %55 = vector.extract_strided_slice %30 {offsets = [12, 0], sizes = [1, 240], strides = [1, 1]} : vector<24x240xf32> to vector<1x240xf32>
    %56 = vector.extract_strided_slice %30 {offsets = [13, 0], sizes = [1, 240], strides = [1, 1]} : vector<24x240xf32> to vector<1x240xf32>
    %57 = arith.maximumf %55, %56 : vector<1x240xf32>
    %c6 = arith.constant 6 : index
    %c0_32 = arith.constant 0 : index
    %58 = vector.load %arg11[%c6, %c0_32] : memref<12x240xf32, #tpu.memory_space<vmem>>, vector<1x240xf32>
    tpu.vector_store %arg11[%c6, %c0_32], %57 {strides = array<i32>} : memref<12x240xf32, #tpu.memory_space<vmem>>, vector<1x240xf32>,
    %59 = vector.extract_strided_slice %30 {offsets = [14, 0], sizes = [1, 240], strides = [1, 1]} : vector<24x240xf32> to vector<1x240xf32>
    %60 = vector.extract_strided_slice %30 {offsets = [15, 0], sizes = [1, 240], strides = [1, 1]} : vector<24x240xf32> to vector<1x240xf32>
    %61 = arith.maximumf %59, %60 : vector<1x240xf32>
    %c7 = arith.constant 7 : index
    %c0_33 = arith.constant 0 : index
    %62 = vector.load %arg11[%c7, %c0_33] : memref<12x240xf32, #tpu.memory_space<vmem>>, vector<1x240xf32>
    tpu.vector_store %arg11[%c7, %c0_33], %61 {strides = array<i32>} : memref<12x240xf32, #tpu.memory_space<vmem>>, vector<1x240xf32>,
    %63 = vector.extract_strided_slice %30 {offsets = [16, 0], sizes = [1, 240], strides = [1, 1]} : vector<24x240xf32> to vector<1x240xf32>
    %64 = vector.extract_strided_slice %30 {offsets = [17, 0], sizes = [1, 240], strides = [1, 1]} : vector<24x240xf32> to vector<1x240xf32>
    %65 = arith.maximumf %63, %64 : vector<1x240xf32>
    %c8 = arith.constant 8 : index
    %c0_34 = arith.constant 0 : index
    %66 = vector.load %arg11[%c8, %c0_34] : memref<12x240xf32, #tpu.memory_space<vmem>>, vector<1x240xf32>
    tpu.vector_store %arg11[%c8, %c0_34], %65 {strides = array<i32>} : memref<12x240xf32, #tpu.memory_space<vmem>>, vector<1x240xf32>,
    %67 = vector.extract_strided_slice %30 {offsets = [18, 0], sizes = [1, 240], strides = [1, 1]} : vector<24x240xf32> to vector<1x240xf32>
    %68 = vector.extract_strided_slice %30 {offsets = [19, 0], sizes = [1, 240], strides = [1, 1]} : vector<24x240xf32> to vector<1x240xf32>
    %69 = arith.maximumf %67, %68 : vector<1x240xf32>
    %c9 = arith.constant 9 : index
    %c0_35 = arith.constant 0 : index
    %70 = vector.load %arg11[%c9, %c0_35] : memref<12x240xf32, #tpu.memory_space<vmem>>, vector<1x240xf32>
    tpu.vector_store %arg11[%c9, %c0_35], %69 {strides = array<i32>} : memref<12x240xf32, #tpu.memory_space<vmem>>, vector<1x240xf32>,
    %71 = vector.extract_strided_slice %30 {offsets = [20, 0], sizes = [1, 240], strides = [1, 1]} : vector<24x240xf32> to vector<1x240xf32>
    %72 = vector.extract_strided_slice %30 {offsets = [21, 0], sizes = [1, 240], strides = [1, 1]} : vector<24x240xf32> to vector<1x240xf32>
    %73 = arith.maximumf %71, %72 : vector<1x240xf32>
    %c10 = arith.constant 10 : index
    %c0_36 = arith.constant 0 : index
    %74 = vector.load %arg11[%c10, %c0_36] : memref<12x240xf32, #tpu.memory_space<vmem>>, vector<1x240xf32>
    tpu.vector_store %arg11[%c10, %c0_36], %73 {strides = array<i32>} : memref<12x240xf32, #tpu.memory_space<vmem>>, vector<1x240xf32>,
    %75 = vector.extract_strided_slice %30 {offsets = [22, 0], sizes = [1, 240], strides = [1, 1]} : vector<24x240xf32> to vector<1x240xf32>
    %76 = vector.extract_strided_slice %30 {offsets = [23, 0], sizes = [1, 240], strides = [1, 1]} : vector<24x240xf32> to vector<1x240xf32>
    %77 = arith.maximumf %75, %76 : vector<1x240xf32>
    %c11 = arith.constant 11 : index
    %c0_37 = arith.constant 0 : index
    %78 = vector.load %arg11[%c11, %c0_37] : memref<12x240xf32, #tpu.memory_space<vmem>>, vector<1x240xf32>
    tpu.vector_store %arg11[%c11, %c0_37], %77 {strides = array<i32>} : memref<12x240xf32, #tpu.memory_space<vmem>>, vector<1x240xf32>,
    %c0_38 = arith.constant 0 : index
    %c0_39 = arith.constant 0 : index
    %79 = vector.load %arg11[%c0_38, %c0_39] : memref<12x240xf32, #tpu.memory_space<vmem>>, vector<12x240xf32>
    %80 = vector.extract_strided_slice %79 {offsets = [0, 0], sizes = [12, 10], strides = [1, 1]} : vector<12x240xf32> to vector<12x10xf32>
    %81 = vector.extract_strided_slice %79 {offsets = [0, 10], sizes = [12, 10], strides = [1, 1]} : vector<12x240xf32> to vector<12x10xf32>
    %82 = arith.maximumf %80, %81 : vector<12x10xf32>
    %cst_40 = arith.constant 0.000000e+00 : f32
    %83 = vector.broadcast %cst_40 : f32 to vector<12x10xf32>
    %84 = arith.maximumf %82, %83 : vector<12x10xf32>
    %c0_41 = arith.constant 0 : index
    %c0_42 = arith.constant 0 : index
    %85 = vector.load %arg12[%c0_41, %c0_42] : memref<12x120xf32, #tpu.memory_space<vmem>>, vector<12x10xf32>
    tpu.vector_store %arg12[%c0_41, %c0_42], %84 {strides = array<i32>} : memref<12x120xf32, #tpu.memory_space<vmem>>, vector<12x10xf32>,
    %86 = vector.extract_strided_slice %79 {offsets = [0, 20], sizes = [12, 10], strides = [1, 1]} : vector<12x240xf32> to vector<12x10xf32>
    %87 = vector.extract_strided_slice %79 {offsets = [0, 30], sizes = [12, 10], strides = [1, 1]} : vector<12x240xf32> to vector<12x10xf32>
    %88 = arith.maximumf %86, %87 : vector<12x10xf32>
    %cst_43 = arith.constant 0.000000e+00 : f32
    %89 = vector.broadcast %cst_43 : f32 to vector<12x10xf32>
    %90 = arith.maximumf %88, %89 : vector<12x10xf32>
    %c0_44 = arith.constant 0 : index
    %c10_45 = arith.constant 10 : index
    %91 = vector.load %arg12[%c0_44, %c10_45] : memref<12x120xf32, #tpu.memory_space<vmem>>, vector<12x10xf32>
    tpu.vector_store %arg12[%c0_44, %c10_45], %90 {strides = array<i32>} : memref<12x120xf32, #tpu.memory_space<vmem>>, vector<12x10xf32>,
    %92 = vector.extract_strided_slice %79 {offsets = [0, 40], sizes = [12, 10], strides = [1, 1]} : vector<12x240xf32> to vector<12x10xf32>
    %93 = vector.extract_strided_slice %79 {offsets = [0, 50], sizes = [12, 10], strides = [1, 1]} : vector<12x240xf32> to vector<12x10xf32>
    %94 = arith.maximumf %92, %93 : vector<12x10xf32>
    %cst_46 = arith.constant 0.000000e+00 : f32
    %95 = vector.broadcast %cst_46 : f32 to vector<12x10xf32>
    %96 = arith.maximumf %94, %95 : vector<12x10xf32>
    %c0_47 = arith.constant 0 : index
    %c20 = arith.constant 20 : index
    %97 = vector.load %arg12[%c0_47, %c20] : memref<12x120xf32, #tpu.memory_space<vmem>>, vector<12x10xf32>
    tpu.vector_store %arg12[%c0_47, %c20], %96 {strides = array<i32>} : memref<12x120xf32, #tpu.memory_space<vmem>>, vector<12x10xf32>,
    %98 = vector.extract_strided_slice %79 {offsets = [0, 60], sizes = [12, 10], strides = [1, 1]} : vector<12x240xf32> to vector<12x10xf32>
    %99 = vector.extract_strided_slice %79 {offsets = [0, 70], sizes = [12, 10], strides = [1, 1]} : vector<12x240xf32> to vector<12x10xf32>
    %100 = arith.maximumf %98, %99 : vector<12x10xf32>
    %cst_48 = arith.constant 0.000000e+00 : f32
    %101 = vector.broadcast %cst_48 : f32 to vector<12x10xf32>
    %102 = arith.maximumf %100, %101 : vector<12x10xf32>
    %c0_49 = arith.constant 0 : index
    %c30 = arith.constant 30 : index
    %103 = vector.load %arg12[%c0_49, %c30] : memref<12x120xf32, #tpu.memory_space<vmem>>, vector<12x10xf32>
    tpu.vector_store %arg12[%c0_49, %c30], %102 {strides = array<i32>} : memref<12x120xf32, #tpu.memory_space<vmem>>, vector<12x10xf32>,
    %104 = vector.extract_strided_slice %79 {offsets = [0, 80], sizes = [12, 10], strides = [1, 1]} : vector<12x240xf32> to vector<12x10xf32>
    %105 = vector.extract_strided_slice %79 {offsets = [0, 90], sizes = [12, 10], strides = [1, 1]} : vector<12x240xf32> to vector<12x10xf32>
    %106 = arith.maximumf %104, %105 : vector<12x10xf32>
    %cst_50 = arith.constant 0.000000e+00 : f32
    %107 = vector.broadcast %cst_50 : f32 to vector<12x10xf32>
    %108 = arith.maximumf %106, %107 : vector<12x10xf32>
    %c0_51 = arith.constant 0 : index
    %c40 = arith.constant 40 : index
    %109 = vector.load %arg12[%c0_51, %c40] : memref<12x120xf32, #tpu.memory_space<vmem>>, vector<12x10xf32>
    tpu.vector_store %arg12[%c0_51, %c40], %108 {strides = array<i32>} : memref<12x120xf32, #tpu.memory_space<vmem>>, vector<12x10xf32>,
    %110 = vector.extract_strided_slice %79 {offsets = [0, 100], sizes = [12, 10], strides = [1, 1]} : vector<12x240xf32> to vector<12x10xf32>
    %111 = vector.extract_strided_slice %79 {offsets = [0, 110], sizes = [12, 10], strides = [1, 1]} : vector<12x240xf32> to vector<12x10xf32>
    %112 = arith.maximumf %110, %111 : vector<12x10xf32>
    %cst_52 = arith.constant 0.000000e+00 : f32
    %113 = vector.broadcast %cst_52 : f32 to vector<12x10xf32>
    %114 = arith.maximumf %112, %113 : vector<12x10xf32>
    %c0_53 = arith.constant 0 : index
    %c50 = arith.constant 50 : index
    %115 = vector.load %arg12[%c0_53, %c50] : memref<12x120xf32, #tpu.memory_space<vmem>>, vector<12x10xf32>
    tpu.vector_store %arg12[%c0_53, %c50], %114 {strides = array<i32>} : memref<12x120xf32, #tpu.memory_space<vmem>>, vector<12x10xf32>,
    %116 = vector.extract_strided_slice %79 {offsets = [0, 120], sizes = [12, 10], strides = [1, 1]} : vector<12x240xf32> to vector<12x10xf32>
    %117 = vector.extract_strided_slice %79 {offsets = [0, 130], sizes = [12, 10], strides = [1, 1]} : vector<12x240xf32> to vector<12x10xf32>
    %118 = arith.maximumf %116, %117 : vector<12x10xf32>
    %cst_54 = arith.constant 0.000000e+00 : f32
    %119 = vector.broadcast %cst_54 : f32 to vector<12x10xf32>
    %120 = arith.maximumf %118, %119 : vector<12x10xf32>
    %c0_55 = arith.constant 0 : index
    %c60 = arith.constant 60 : index
    %121 = vector.load %arg12[%c0_55, %c60] : memref<12x120xf32, #tpu.memory_space<vmem>>, vector<12x10xf32>
    tpu.vector_store %arg12[%c0_55, %c60], %120 {strides = array<i32>} : memref<12x120xf32, #tpu.memory_space<vmem>>, vector<12x10xf32>,
    %122 = vector.extract_strided_slice %79 {offsets = [0, 140], sizes = [12, 10], strides = [1, 1]} : vector<12x240xf32> to vector<12x10xf32>
    %123 = vector.extract_strided_slice %79 {offsets = [0, 150], sizes = [12, 10], strides = [1, 1]} : vector<12x240xf32> to vector<12x10xf32>
    %124 = arith.maximumf %122, %123 : vector<12x10xf32>
    %cst_56 = arith.constant 0.000000e+00 : f32
    %125 = vector.broadcast %cst_56 : f32 to vector<12x10xf32>
    %126 = arith.maximumf %124, %125 : vector<12x10xf32>
    %c0_57 = arith.constant 0 : index
    %c70 = arith.constant 70 : index
    %127 = vector.load %arg12[%c0_57, %c70] : memref<12x120xf32, #tpu.memory_space<vmem>>, vector<12x10xf32>
    tpu.vector_store %arg12[%c0_57, %c70], %126 {strides = array<i32>} : memref<12x120xf32, #tpu.memory_space<vmem>>, vector<12x10xf32>,
    %128 = vector.extract_strided_slice %79 {offsets = [0, 160], sizes = [12, 10], strides = [1, 1]} : vector<12x240xf32> to vector<12x10xf32>
    %129 = vector.extract_strided_slice %79 {offsets = [0, 170], sizes = [12, 10], strides = [1, 1]} : vector<12x240xf32> to vector<12x10xf32>
    %130 = arith.maximumf %128, %129 : vector<12x10xf32>
    %cst_58 = arith.constant 0.000000e+00 : f32
    %131 = vector.broadcast %cst_58 : f32 to vector<12x10xf32>
    %132 = arith.maximumf %130, %131 : vector<12x10xf32>
    %c0_59 = arith.constant 0 : index
    %c80 = arith.constant 80 : index
    %133 = vector.load %arg12[%c0_59, %c80] : memref<12x120xf32, #tpu.memory_space<vmem>>, vector<12x10xf32>
    tpu.vector_store %arg12[%c0_59, %c80], %132 {strides = array<i32>} : memref<12x120xf32, #tpu.memory_space<vmem>>, vector<12x10xf32>,
    %134 = vector.extract_strided_slice %79 {offsets = [0, 180], sizes = [12, 10], strides = [1, 1]} : vector<12x240xf32> to vector<12x10xf32>
    %135 = vector.extract_strided_slice %79 {offsets = [0, 190], sizes = [12, 10], strides = [1, 1]} : vector<12x240xf32> to vector<12x10xf32>
    %136 = arith.maximumf %134, %135 : vector<12x10xf32>
    %cst_60 = arith.constant 0.000000e+00 : f32
    %137 = vector.broadcast %cst_60 : f32 to vector<12x10xf32>
    %138 = arith.maximumf %136, %137 : vector<12x10xf32>
    %c0_61 = arith.constant 0 : index
    %c90 = arith.constant 90 : index
    %139 = vector.load %arg12[%c0_61, %c90] : memref<12x120xf32, #tpu.memory_space<vmem>>, vector<12x10xf32>
    tpu.vector_store %arg12[%c0_61, %c90], %138 {strides = array<i32>} : memref<12x120xf32, #tpu.memory_space<vmem>>, vector<12x10xf32>,
    %140 = vector.extract_strided_slice %79 {offsets = [0, 200], sizes = [12, 10], strides = [1, 1]} : vector<12x240xf32> to vector<12x10xf32>
    %141 = vector.extract_strided_slice %79 {offsets = [0, 210], sizes = [12, 10], strides = [1, 1]} : vector<12x240xf32> to vector<12x10xf32>
    %142 = arith.maximumf %140, %141 : vector<12x10xf32>
    %cst_62 = arith.constant 0.000000e+00 : f32
    %143 = vector.broadcast %cst_62 : f32 to vector<12x10xf32>
    %144 = arith.maximumf %142, %143 : vector<12x10xf32>
    %c0_63 = arith.constant 0 : index
    %c100 = arith.constant 100 : index
    %145 = vector.load %arg12[%c0_63, %c100] : memref<12x120xf32, #tpu.memory_space<vmem>>, vector<12x10xf32>
    tpu.vector_store %arg12[%c0_63, %c100], %144 {strides = array<i32>} : memref<12x120xf32, #tpu.memory_space<vmem>>, vector<12x10xf32>,
    %146 = vector.extract_strided_slice %79 {offsets = [0, 220], sizes = [12, 10], strides = [1, 1]} : vector<12x240xf32> to vector<12x10xf32>
    %147 = vector.extract_strided_slice %79 {offsets = [0, 230], sizes = [12, 10], strides = [1, 1]} : vector<12x240xf32> to vector<12x10xf32>
    %148 = arith.maximumf %146, %147 : vector<12x10xf32>
    %cst_64 = arith.constant 0.000000e+00 : f32
    %149 = vector.broadcast %cst_64 : f32 to vector<12x10xf32>
    %150 = arith.maximumf %148, %149 : vector<12x10xf32>
    %c0_65 = arith.constant 0 : index
    %c110 = arith.constant 110 : index
    %151 = vector.load %arg12[%c0_65, %c110] : memref<12x120xf32, #tpu.memory_space<vmem>>, vector<12x10xf32>
    tpu.vector_store %arg12[%c0_65, %c110], %150 {strides = array<i32>} : memref<12x120xf32, #tpu.memory_space<vmem>>, vector<12x10xf32>,
    %cst_66 = arith.constant 0.000000e+00 : f32
    %152 = vector.broadcast %cst_66 : f32 to vector<8x160xf32>
    %c0_67 = arith.constant 0 : index
    %c0_68 = arith.constant 0 : index
    %153 = vector.load %arg12[%c0_67, %c0_68] : memref<12x120xf32, #tpu.memory_space<vmem>>, vector<8x120xf32>
    %c0_69 = arith.constant 0 : index
    %c0_70 = arith.constant 0 : index
    %c0_71 = arith.constant 0 : index
    %154 = vector.load %arg4[%c0_69, %c0_70, %c0_71] : memref<5x120x160xf32, #tpu.memory_space<vmem>>, vector<1x120x160xf32>
    %155 = vector.shape_cast %154 : vector<1x120x160xf32> to vector<120x160xf32>
    %cst_72 = arith.constant dense<0.000000e+00> : vector<8x160xf32>
    %156 = tpu.matmul %153, %155, %cst_72 {dimension_numbers = #tpu.dot_dimension_numbers<[1], [0], [0], [1], [0, 0, 1, 1], [], []>} : vector<8x120xf32>, vector<120x160xf32>, vector<8x160xf32> -> vector<8x160xf32>
    %157 = arith.addf %152, %156 : vector<8x160xf32>
    %c1_73 = arith.constant 1 : index
    %c0_74 = arith.constant 0 : index
    %158 = vector.load %arg12[%c1_73, %c0_74] : memref<12x120xf32, #tpu.memory_space<vmem>>, vector<8x120xf32>
    %c1_75 = arith.constant 1 : index
    %c0_76 = arith.constant 0 : index
    %c0_77 = arith.constant 0 : index
    %159 = vector.load %arg4[%c1_75, %c0_76, %c0_77] : memref<5x120x160xf32, #tpu.memory_space<vmem>>, vector<1x120x160xf32>
    %160 = vector.shape_cast %159 : vector<1x120x160xf32> to vector<120x160xf32>
    %cst_78 = arith.constant dense<0.000000e+00> : vector<8x160xf32>
    %161 = tpu.matmul %158, %160, %cst_78 {dimension_numbers = #tpu.dot_dimension_numbers<[1], [0], [0], [1], [0, 0, 1, 1], [], []>} : vector<8x120xf32>, vector<120x160xf32>, vector<8x160xf32> -> vector<8x160xf32>
    %162 = arith.addf %157, %161 : vector<8x160xf32>
    %c2_79 = arith.constant 2 : index
    %c0_80 = arith.constant 0 : index
    %163 = vector.load %arg12[%c2_79, %c0_80] : memref<12x120xf32, #tpu.memory_space<vmem>>, vector<8x120xf32>
    %c2_81 = arith.constant 2 : index
    %c0_82 = arith.constant 0 : index
    %c0_83 = arith.constant 0 : index
    %164 = vector.load %arg4[%c2_81, %c0_82, %c0_83] : memref<5x120x160xf32, #tpu.memory_space<vmem>>, vector<1x120x160xf32>
    %165 = vector.shape_cast %164 : vector<1x120x160xf32> to vector<120x160xf32>
    %cst_84 = arith.constant dense<0.000000e+00> : vector<8x160xf32>
    %166 = tpu.matmul %163, %165, %cst_84 {dimension_numbers = #tpu.dot_dimension_numbers<[1], [0], [0], [1], [0, 0, 1, 1], [], []>} : vector<8x120xf32>, vector<120x160xf32>, vector<8x160xf32> -> vector<8x160xf32>
    %167 = arith.addf %162, %166 : vector<8x160xf32>
    %c3_85 = arith.constant 3 : index
    %c0_86 = arith.constant 0 : index
    %168 = vector.load %arg12[%c3_85, %c0_86] : memref<12x120xf32, #tpu.memory_space<vmem>>, vector<8x120xf32>
    %c3_87 = arith.constant 3 : index
    %c0_88 = arith.constant 0 : index
    %c0_89 = arith.constant 0 : index
    %169 = vector.load %arg4[%c3_87, %c0_88, %c0_89] : memref<5x120x160xf32, #tpu.memory_space<vmem>>, vector<1x120x160xf32>
    %170 = vector.shape_cast %169 : vector<1x120x160xf32> to vector<120x160xf32>
    %cst_90 = arith.constant dense<0.000000e+00> : vector<8x160xf32>
    %171 = tpu.matmul %168, %170, %cst_90 {dimension_numbers = #tpu.dot_dimension_numbers<[1], [0], [0], [1], [0, 0, 1, 1], [], []>} : vector<8x120xf32>, vector<120x160xf32>, vector<8x160xf32> -> vector<8x160xf32>
    %172 = arith.addf %167, %171 : vector<8x160xf32>
    %c4_91 = arith.constant 4 : index
    %c0_92 = arith.constant 0 : index
    %173 = vector.load %arg12[%c4_91, %c0_92] : memref<12x120xf32, #tpu.memory_space<vmem>>, vector<8x120xf32>
    %c4_93 = arith.constant 4 : index
    %c0_94 = arith.constant 0 : index
    %c0_95 = arith.constant 0 : index
    %174 = vector.load %arg4[%c4_93, %c0_94, %c0_95] : memref<5x120x160xf32, #tpu.memory_space<vmem>>, vector<1x120x160xf32>
    %175 = vector.shape_cast %174 : vector<1x120x160xf32> to vector<120x160xf32>
    %cst_96 = arith.constant dense<0.000000e+00> : vector<8x160xf32>
    %176 = tpu.matmul %173, %175, %cst_96 {dimension_numbers = #tpu.dot_dimension_numbers<[1], [0], [0], [1], [0, 0, 1, 1], [], []>} : vector<8x120xf32>, vector<120x160xf32>, vector<8x160xf32> -> vector<8x160xf32>
    %177 = arith.addf %172, %176 : vector<8x160xf32>
    %c0_97 = arith.constant 0 : index
    %c0_98 = arith.constant 0 : index
    %178 = vector.load %arg5[%c0_97, %c0_98] : memref<1x160xf32, #tpu.memory_space<vmem>>, vector<1x160xf32>
    %179 = vector.broadcast %178 : vector<1x160xf32> to vector<8x160xf32>
    %180 = arith.addf %177, %179 : vector<8x160xf32>
    %181 = vector.extract_strided_slice %180 {offsets = [0, 0], sizes = [1, 20], strides = [1, 1]} : vector<8x160xf32> to vector<1x20xf32>
    %182 = vector.extract_strided_slice %180 {offsets = [0, 20], sizes = [1, 20], strides = [1, 1]} : vector<8x160xf32> to vector<1x20xf32>
    %183 = arith.maximumf %181, %182 : vector<1x20xf32>
    %184 = vector.extract_strided_slice %180 {offsets = [1, 0], sizes = [1, 20], strides = [1, 1]} : vector<8x160xf32> to vector<1x20xf32>
    %185 = vector.extract_strided_slice %180 {offsets = [1, 20], sizes = [1, 20], strides = [1, 1]} : vector<8x160xf32> to vector<1x20xf32>
    %186 = arith.maximumf %184, %185 : vector<1x20xf32>
    %187 = arith.maximumf %183, %186 : vector<1x20xf32>
    %cst_99 = arith.constant 0.000000e+00 : f32
    %188 = vector.broadcast %cst_99 : f32 to vector<1x20xf32>
    %189 = arith.maximumf %187, %188 : vector<1x20xf32>
    %c0_100 = arith.constant 0 : index
    %c0_101 = arith.constant 0 : index
    %190 = vector.load %arg13[%c0_100, %c0_101] : memref<1x320xf32, #tpu.memory_space<vmem>>, vector<1x20xf32>
    tpu.vector_store %arg13[%c0_100, %c0_101], %189 {strides = array<i32>} : memref<1x320xf32, #tpu.memory_space<vmem>>, vector<1x20xf32>,
    %191 = vector.extract_strided_slice %180 {offsets = [0, 40], sizes = [1, 20], strides = [1, 1]} : vector<8x160xf32> to vector<1x20xf32>
    %192 = vector.extract_strided_slice %180 {offsets = [0, 60], sizes = [1, 20], strides = [1, 1]} : vector<8x160xf32> to vector<1x20xf32>
    %193 = arith.maximumf %191, %192 : vector<1x20xf32>
    %194 = vector.extract_strided_slice %180 {offsets = [1, 40], sizes = [1, 20], strides = [1, 1]} : vector<8x160xf32> to vector<1x20xf32>
    %195 = vector.extract_strided_slice %180 {offsets = [1, 60], sizes = [1, 20], strides = [1, 1]} : vector<8x160xf32> to vector<1x20xf32>
    %196 = arith.maximumf %194, %195 : vector<1x20xf32>
    %197 = arith.maximumf %193, %196 : vector<1x20xf32>
    %cst_102 = arith.constant 0.000000e+00 : f32
    %198 = vector.broadcast %cst_102 : f32 to vector<1x20xf32>
    %199 = arith.maximumf %197, %198 : vector<1x20xf32>
    %c0_103 = arith.constant 0 : index
    %c20_104 = arith.constant 20 : index
    %200 = vector.load %arg13[%c0_103, %c20_104] : memref<1x320xf32, #tpu.memory_space<vmem>>, vector<1x20xf32>
    tpu.vector_store %arg13[%c0_103, %c20_104], %199 {strides = array<i32>} : memref<1x320xf32, #tpu.memory_space<vmem>>, vector<1x20xf32>,
    %201 = vector.extract_strided_slice %180 {offsets = [0, 80], sizes = [1, 20], strides = [1, 1]} : vector<8x160xf32> to vector<1x20xf32>
    %202 = vector.extract_strided_slice %180 {offsets = [0, 100], sizes = [1, 20], strides = [1, 1]} : vector<8x160xf32> to vector<1x20xf32>
    %203 = arith.maximumf %201, %202 : vector<1x20xf32>
    %204 = vector.extract_strided_slice %180 {offsets = [1, 80], sizes = [1, 20], strides = [1, 1]} : vector<8x160xf32> to vector<1x20xf32>
    %205 = vector.extract_strided_slice %180 {offsets = [1, 100], sizes = [1, 20], strides = [1, 1]} : vector<8x160xf32> to vector<1x20xf32>
    %206 = arith.maximumf %204, %205 : vector<1x20xf32>
    %207 = arith.maximumf %203, %206 : vector<1x20xf32>
    %cst_105 = arith.constant 0.000000e+00 : f32
    %208 = vector.broadcast %cst_105 : f32 to vector<1x20xf32>
    %209 = arith.maximumf %207, %208 : vector<1x20xf32>
    %c0_106 = arith.constant 0 : index
    %c40_107 = arith.constant 40 : index
    %210 = vector.load %arg13[%c0_106, %c40_107] : memref<1x320xf32, #tpu.memory_space<vmem>>, vector<1x20xf32>
    tpu.vector_store %arg13[%c0_106, %c40_107], %209 {strides = array<i32>} : memref<1x320xf32, #tpu.memory_space<vmem>>, vector<1x20xf32>,
    %211 = vector.extract_strided_slice %180 {offsets = [0, 120], sizes = [1, 20], strides = [1, 1]} : vector<8x160xf32> to vector<1x20xf32>
    %212 = vector.extract_strided_slice %180 {offsets = [0, 140], sizes = [1, 20], strides = [1, 1]} : vector<8x160xf32> to vector<1x20xf32>
    %213 = arith.maximumf %211, %212 : vector<1x20xf32>
    %214 = vector.extract_strided_slice %180 {offsets = [1, 120], sizes = [1, 20], strides = [1, 1]} : vector<8x160xf32> to vector<1x20xf32>
    %215 = vector.extract_strided_slice %180 {offsets = [1, 140], sizes = [1, 20], strides = [1, 1]} : vector<8x160xf32> to vector<1x20xf32>
    %216 = arith.maximumf %214, %215 : vector<1x20xf32>
    %217 = arith.maximumf %213, %216 : vector<1x20xf32>
    %cst_108 = arith.constant 0.000000e+00 : f32
    %218 = vector.broadcast %cst_108 : f32 to vector<1x20xf32>
    %219 = arith.maximumf %217, %218 : vector<1x20xf32>
    %c0_109 = arith.constant 0 : index
    %c60_110 = arith.constant 60 : index
    %220 = vector.load %arg13[%c0_109, %c60_110] : memref<1x320xf32, #tpu.memory_space<vmem>>, vector<1x20xf32>
    tpu.vector_store %arg13[%c0_109, %c60_110], %219 {strides = array<i32>} : memref<1x320xf32, #tpu.memory_space<vmem>>, vector<1x20xf32>,
    %221 = vector.extract_strided_slice %180 {offsets = [2, 0], sizes = [1, 20], strides = [1, 1]} : vector<8x160xf32> to vector<1x20xf32>
    %222 = vector.extract_strided_slice %180 {offsets = [2, 20], sizes = [1, 20], strides = [1, 1]} : vector<8x160xf32> to vector<1x20xf32>
    %223 = arith.maximumf %221, %222 : vector<1x20xf32>
    %224 = vector.extract_strided_slice %180 {offsets = [3, 0], sizes = [1, 20], strides = [1, 1]} : vector<8x160xf32> to vector<1x20xf32>
    %225 = vector.extract_strided_slice %180 {offsets = [3, 20], sizes = [1, 20], strides = [1, 1]} : vector<8x160xf32> to vector<1x20xf32>
    %226 = arith.maximumf %224, %225 : vector<1x20xf32>
    %227 = arith.maximumf %223, %226 : vector<1x20xf32>
    %cst_111 = arith.constant 0.000000e+00 : f32
    %228 = vector.broadcast %cst_111 : f32 to vector<1x20xf32>
    %229 = arith.maximumf %227, %228 : vector<1x20xf32>
    %c0_112 = arith.constant 0 : index
    %c80_113 = arith.constant 80 : index
    %230 = vector.load %arg13[%c0_112, %c80_113] : memref<1x320xf32, #tpu.memory_space<vmem>>, vector<1x20xf32>
    tpu.vector_store %arg13[%c0_112, %c80_113], %229 {strides = array<i32>} : memref<1x320xf32, #tpu.memory_space<vmem>>, vector<1x20xf32>,
    %231 = vector.extract_strided_slice %180 {offsets = [2, 40], sizes = [1, 20], strides = [1, 1]} : vector<8x160xf32> to vector<1x20xf32>
    %232 = vector.extract_strided_slice %180 {offsets = [2, 60], sizes = [1, 20], strides = [1, 1]} : vector<8x160xf32> to vector<1x20xf32>
    %233 = arith.maximumf %231, %232 : vector<1x20xf32>
    %234 = vector.extract_strided_slice %180 {offsets = [3, 40], sizes = [1, 20], strides = [1, 1]} : vector<8x160xf32> to vector<1x20xf32>
    %235 = vector.extract_strided_slice %180 {offsets = [3, 60], sizes = [1, 20], strides = [1, 1]} : vector<8x160xf32> to vector<1x20xf32>
    %236 = arith.maximumf %234, %235 : vector<1x20xf32>
    %237 = arith.maximumf %233, %236 : vector<1x20xf32>
    %cst_114 = arith.constant 0.000000e+00 : f32
    %238 = vector.broadcast %cst_114 : f32 to vector<1x20xf32>
    %239 = arith.maximumf %237, %238 : vector<1x20xf32>
    %c0_115 = arith.constant 0 : index
    %c100_116 = arith.constant 100 : index
    %240 = vector.load %arg13[%c0_115, %c100_116] : memref<1x320xf32, #tpu.memory_space<vmem>>, vector<1x20xf32>
    tpu.vector_store %arg13[%c0_115, %c100_116], %239 {strides = array<i32>} : memref<1x320xf32, #tpu.memory_space<vmem>>, vector<1x20xf32>,
    %241 = vector.extract_strided_slice %180 {offsets = [2, 80], sizes = [1, 20], strides = [1, 1]} : vector<8x160xf32> to vector<1x20xf32>
    %242 = vector.extract_strided_slice %180 {offsets = [2, 100], sizes = [1, 20], strides = [1, 1]} : vector<8x160xf32> to vector<1x20xf32>
    %243 = arith.maximumf %241, %242 : vector<1x20xf32>
    %244 = vector.extract_strided_slice %180 {offsets = [3, 80], sizes = [1, 20], strides = [1, 1]} : vector<8x160xf32> to vector<1x20xf32>
    %245 = vector.extract_strided_slice %180 {offsets = [3, 100], sizes = [1, 20], strides = [1, 1]} : vector<8x160xf32> to vector<1x20xf32>
    %246 = arith.maximumf %244, %245 : vector<1x20xf32>
    %247 = arith.maximumf %243, %246 : vector<1x20xf32>
    %cst_117 = arith.constant 0.000000e+00 : f32
    %248 = vector.broadcast %cst_117 : f32 to vector<1x20xf32>
    %249 = arith.maximumf %247, %248 : vector<1x20xf32>
    %c0_118 = arith.constant 0 : index
    %c120 = arith.constant 120 : index
    %250 = vector.load %arg13[%c0_118, %c120] : memref<1x320xf32, #tpu.memory_space<vmem>>, vector<1x20xf32>
    tpu.vector_store %arg13[%c0_118, %c120], %249 {strides = array<i32>} : memref<1x320xf32, #tpu.memory_space<vmem>>, vector<1x20xf32>,
    %251 = vector.extract_strided_slice %180 {offsets = [2, 120], sizes = [1, 20], strides = [1, 1]} : vector<8x160xf32> to vector<1x20xf32>
    %252 = vector.extract_strided_slice %180 {offsets = [2, 140], sizes = [1, 20], strides = [1, 1]} : vector<8x160xf32> to vector<1x20xf32>
    %253 = arith.maximumf %251, %252 : vector<1x20xf32>
    %254 = vector.extract_strided_slice %180 {offsets = [3, 120], sizes = [1, 20], strides = [1, 1]} : vector<8x160xf32> to vector<1x20xf32>
    %255 = vector.extract_strided_slice %180 {offsets = [3, 140], sizes = [1, 20], strides = [1, 1]} : vector<8x160xf32> to vector<1x20xf32>
    %256 = arith.maximumf %254, %255 : vector<1x20xf32>
    %257 = arith.maximumf %253, %256 : vector<1x20xf32>
    %cst_119 = arith.constant 0.000000e+00 : f32
    %258 = vector.broadcast %cst_119 : f32 to vector<1x20xf32>
    %259 = arith.maximumf %257, %258 : vector<1x20xf32>
    %c0_120 = arith.constant 0 : index
    %c140 = arith.constant 140 : index
    %260 = vector.load %arg13[%c0_120, %c140] : memref<1x320xf32, #tpu.memory_space<vmem>>, vector<1x20xf32>
    tpu.vector_store %arg13[%c0_120, %c140], %259 {strides = array<i32>} : memref<1x320xf32, #tpu.memory_space<vmem>>, vector<1x20xf32>,
    %261 = vector.extract_strided_slice %180 {offsets = [4, 0], sizes = [1, 20], strides = [1, 1]} : vector<8x160xf32> to vector<1x20xf32>
    %262 = vector.extract_strided_slice %180 {offsets = [4, 20], sizes = [1, 20], strides = [1, 1]} : vector<8x160xf32> to vector<1x20xf32>
    %263 = arith.maximumf %261, %262 : vector<1x20xf32>
    %264 = vector.extract_strided_slice %180 {offsets = [5, 0], sizes = [1, 20], strides = [1, 1]} : vector<8x160xf32> to vector<1x20xf32>
    %265 = vector.extract_strided_slice %180 {offsets = [5, 20], sizes = [1, 20], strides = [1, 1]} : vector<8x160xf32> to vector<1x20xf32>
    %266 = arith.maximumf %264, %265 : vector<1x20xf32>
    %267 = arith.maximumf %263, %266 : vector<1x20xf32>
    %cst_121 = arith.constant 0.000000e+00 : f32
    %268 = vector.broadcast %cst_121 : f32 to vector<1x20xf32>
    %269 = arith.maximumf %267, %268 : vector<1x20xf32>
    %c0_122 = arith.constant 0 : index
    %c160 = arith.constant 160 : index
    %270 = vector.load %arg13[%c0_122, %c160] : memref<1x320xf32, #tpu.memory_space<vmem>>, vector<1x20xf32>
    tpu.vector_store %arg13[%c0_122, %c160], %269 {strides = array<i32>} : memref<1x320xf32, #tpu.memory_space<vmem>>, vector<1x20xf32>,
    %271 = vector.extract_strided_slice %180 {offsets = [4, 40], sizes = [1, 20], strides = [1, 1]} : vector<8x160xf32> to vector<1x20xf32>
    %272 = vector.extract_strided_slice %180 {offsets = [4, 60], sizes = [1, 20], strides = [1, 1]} : vector<8x160xf32> to vector<1x20xf32>
    %273 = arith.maximumf %271, %272 : vector<1x20xf32>
    %274 = vector.extract_strided_slice %180 {offsets = [5, 40], sizes = [1, 20], strides = [1, 1]} : vector<8x160xf32> to vector<1x20xf32>
    %275 = vector.extract_strided_slice %180 {offsets = [5, 60], sizes = [1, 20], strides = [1, 1]} : vector<8x160xf32> to vector<1x20xf32>
    %276 = arith.maximumf %274, %275 : vector<1x20xf32>
    %277 = arith.maximumf %273, %276 : vector<1x20xf32>
    %cst_123 = arith.constant 0.000000e+00 : f32
    %278 = vector.broadcast %cst_123 : f32 to vector<1x20xf32>
    %279 = arith.maximumf %277, %278 : vector<1x20xf32>
    %c0_124 = arith.constant 0 : index
    %c180 = arith.constant 180 : index
    %280 = vector.load %arg13[%c0_124, %c180] : memref<1x320xf32, #tpu.memory_space<vmem>>, vector<1x20xf32>
    tpu.vector_store %arg13[%c0_124, %c180], %279 {strides = array<i32>} : memref<1x320xf32, #tpu.memory_space<vmem>>, vector<1x20xf32>,
    %281 = vector.extract_strided_slice %180 {offsets = [4, 80], sizes = [1, 20], strides = [1, 1]} : vector<8x160xf32> to vector<1x20xf32>
    %282 = vector.extract_strided_slice %180 {offsets = [4, 100], sizes = [1, 20], strides = [1, 1]} : vector<8x160xf32> to vector<1x20xf32>
    %283 = arith.maximumf %281, %282 : vector<1x20xf32>
    %284 = vector.extract_strided_slice %180 {offsets = [5, 80], sizes = [1, 20], strides = [1, 1]} : vector<8x160xf32> to vector<1x20xf32>
    %285 = vector.extract_strided_slice %180 {offsets = [5, 100], sizes = [1, 20], strides = [1, 1]} : vector<8x160xf32> to vector<1x20xf32>
    %286 = arith.maximumf %284, %285 : vector<1x20xf32>
    %287 = arith.maximumf %283, %286 : vector<1x20xf32>
    %cst_125 = arith.constant 0.000000e+00 : f32
    %288 = vector.broadcast %cst_125 : f32 to vector<1x20xf32>
    %289 = arith.maximumf %287, %288 : vector<1x20xf32>
    %c0_126 = arith.constant 0 : index
    %c200 = arith.constant 200 : index
    %290 = vector.load %arg13[%c0_126, %c200] : memref<1x320xf32, #tpu.memory_space<vmem>>, vector<1x20xf32>
    tpu.vector_store %arg13[%c0_126, %c200], %289 {strides = array<i32>} : memref<1x320xf32, #tpu.memory_space<vmem>>, vector<1x20xf32>,
    %291 = vector.extract_strided_slice %180 {offsets = [4, 120], sizes = [1, 20], strides = [1, 1]} : vector<8x160xf32> to vector<1x20xf32>
    %292 = vector.extract_strided_slice %180 {offsets = [4, 140], sizes = [1, 20], strides = [1, 1]} : vector<8x160xf32> to vector<1x20xf32>
    %293 = arith.maximumf %291, %292 : vector<1x20xf32>
    %294 = vector.extract_strided_slice %180 {offsets = [5, 120], sizes = [1, 20], strides = [1, 1]} : vector<8x160xf32> to vector<1x20xf32>
    %295 = vector.extract_strided_slice %180 {offsets = [5, 140], sizes = [1, 20], strides = [1, 1]} : vector<8x160xf32> to vector<1x20xf32>
    %296 = arith.maximumf %294, %295 : vector<1x20xf32>
    %297 = arith.maximumf %293, %296 : vector<1x20xf32>
    %cst_127 = arith.constant 0.000000e+00 : f32
    %298 = vector.broadcast %cst_127 : f32 to vector<1x20xf32>
    %299 = arith.maximumf %297, %298 : vector<1x20xf32>
    %c0_128 = arith.constant 0 : index
    %c220 = arith.constant 220 : index
    %300 = vector.load %arg13[%c0_128, %c220] : memref<1x320xf32, #tpu.memory_space<vmem>>, vector<1x20xf32>
    tpu.vector_store %arg13[%c0_128, %c220], %299 {strides = array<i32>} : memref<1x320xf32, #tpu.memory_space<vmem>>, vector<1x20xf32>,
    %301 = vector.extract_strided_slice %180 {offsets = [6, 0], sizes = [1, 20], strides = [1, 1]} : vector<8x160xf32> to vector<1x20xf32>
    %302 = vector.extract_strided_slice %180 {offsets = [6, 20], sizes = [1, 20], strides = [1, 1]} : vector<8x160xf32> to vector<1x20xf32>
    %303 = arith.maximumf %301, %302 : vector<1x20xf32>
    %304 = vector.extract_strided_slice %180 {offsets = [7, 0], sizes = [1, 20], strides = [1, 1]} : vector<8x160xf32> to vector<1x20xf32>
    %305 = vector.extract_strided_slice %180 {offsets = [7, 20], sizes = [1, 20], strides = [1, 1]} : vector<8x160xf32> to vector<1x20xf32>
    %306 = arith.maximumf %304, %305 : vector<1x20xf32>
    %307 = arith.maximumf %303, %306 : vector<1x20xf32>
    %cst_129 = arith.constant 0.000000e+00 : f32
    %308 = vector.broadcast %cst_129 : f32 to vector<1x20xf32>
    %309 = arith.maximumf %307, %308 : vector<1x20xf32>
    %c0_130 = arith.constant 0 : index
    %c240 = arith.constant 240 : index
    %310 = vector.load %arg13[%c0_130, %c240] : memref<1x320xf32, #tpu.memory_space<vmem>>, vector<1x20xf32>
    tpu.vector_store %arg13[%c0_130, %c240], %309 {strides = array<i32>} : memref<1x320xf32, #tpu.memory_space<vmem>>, vector<1x20xf32>,
    %311 = vector.extract_strided_slice %180 {offsets = [6, 40], sizes = [1, 20], strides = [1, 1]} : vector<8x160xf32> to vector<1x20xf32>
    %312 = vector.extract_strided_slice %180 {offsets = [6, 60], sizes = [1, 20], strides = [1, 1]} : vector<8x160xf32> to vector<1x20xf32>
    %313 = arith.maximumf %311, %312 : vector<1x20xf32>
    %314 = vector.extract_strided_slice %180 {offsets = [7, 40], sizes = [1, 20], strides = [1, 1]} : vector<8x160xf32> to vector<1x20xf32>
    %315 = vector.extract_strided_slice %180 {offsets = [7, 60], sizes = [1, 20], strides = [1, 1]} : vector<8x160xf32> to vector<1x20xf32>
    %316 = arith.maximumf %314, %315 : vector<1x20xf32>
    %317 = arith.maximumf %313, %316 : vector<1x20xf32>
    %cst_131 = arith.constant 0.000000e+00 : f32
    %318 = vector.broadcast %cst_131 : f32 to vector<1x20xf32>
    %319 = arith.maximumf %317, %318 : vector<1x20xf32>
    %c0_132 = arith.constant 0 : index
    %c260 = arith.constant 260 : index
    %320 = vector.load %arg13[%c0_132, %c260] : memref<1x320xf32, #tpu.memory_space<vmem>>, vector<1x20xf32>
    tpu.vector_store %arg13[%c0_132, %c260], %319 {strides = array<i32>} : memref<1x320xf32, #tpu.memory_space<vmem>>, vector<1x20xf32>,
    %321 = vector.extract_strided_slice %180 {offsets = [6, 80], sizes = [1, 20], strides = [1, 1]} : vector<8x160xf32> to vector<1x20xf32>
    %322 = vector.extract_strided_slice %180 {offsets = [6, 100], sizes = [1, 20], strides = [1, 1]} : vector<8x160xf32> to vector<1x20xf32>
    %323 = arith.maximumf %321, %322 : vector<1x20xf32>
    %324 = vector.extract_strided_slice %180 {offsets = [7, 80], sizes = [1, 20], strides = [1, 1]} : vector<8x160xf32> to vector<1x20xf32>
    %325 = vector.extract_strided_slice %180 {offsets = [7, 100], sizes = [1, 20], strides = [1, 1]} : vector<8x160xf32> to vector<1x20xf32>
    %326 = arith.maximumf %324, %325 : vector<1x20xf32>
    %327 = arith.maximumf %323, %326 : vector<1x20xf32>
    %cst_133 = arith.constant 0.000000e+00 : f32
    %328 = vector.broadcast %cst_133 : f32 to vector<1x20xf32>
    %329 = arith.maximumf %327, %328 : vector<1x20xf32>
    %c0_134 = arith.constant 0 : index
    %c280 = arith.constant 280 : index
    %330 = vector.load %arg13[%c0_134, %c280] : memref<1x320xf32, #tpu.memory_space<vmem>>, vector<1x20xf32>
    tpu.vector_store %arg13[%c0_134, %c280], %329 {strides = array<i32>} : memref<1x320xf32, #tpu.memory_space<vmem>>, vector<1x20xf32>,
    %331 = vector.extract_strided_slice %180 {offsets = [6, 120], sizes = [1, 20], strides = [1, 1]} : vector<8x160xf32> to vector<1x20xf32>
    %332 = vector.extract_strided_slice %180 {offsets = [6, 140], sizes = [1, 20], strides = [1, 1]} : vector<8x160xf32> to vector<1x20xf32>
    %333 = arith.maximumf %331, %332 : vector<1x20xf32>
    %334 = vector.extract_strided_slice %180 {offsets = [7, 120], sizes = [1, 20], strides = [1, 1]} : vector<8x160xf32> to vector<1x20xf32>
    %335 = vector.extract_strided_slice %180 {offsets = [7, 140], sizes = [1, 20], strides = [1, 1]} : vector<8x160xf32> to vector<1x20xf32>
    %336 = arith.maximumf %334, %335 : vector<1x20xf32>
    %337 = arith.maximumf %333, %336 : vector<1x20xf32>
    %cst_135 = arith.constant 0.000000e+00 : f32
    %338 = vector.broadcast %cst_135 : f32 to vector<1x20xf32>
    %339 = arith.maximumf %337, %338 : vector<1x20xf32>
    %c0_136 = arith.constant 0 : index
    %c300 = arith.constant 300 : index
    %340 = vector.load %arg13[%c0_136, %c300] : memref<1x320xf32, #tpu.memory_space<vmem>>, vector<1x20xf32>
    tpu.vector_store %arg13[%c0_136, %c300], %339 {strides = array<i32>} : memref<1x320xf32, #tpu.memory_space<vmem>>, vector<1x20xf32>,
    %c0_137 = arith.constant 0 : index
    %c0_138 = arith.constant 0 : index
    %341 = vector.load %arg13[%c0_137, %c0_138] : memref<1x320xf32, #tpu.memory_space<vmem>>, vector<1x320xf32>
    %c0_139 = arith.constant 0 : index
    %c0_140 = arith.constant 0 : index
    %342 = vector.load %arg6[%c0_139, %c0_140] : memref<320x50xf32, #tpu.memory_space<vmem>>, vector<320x50xf32>
    %cst_141 = arith.constant dense<0.000000e+00> : vector<1x50xf32>
    %343 = tpu.matmul %341, %342, %cst_141 {dimension_numbers = #tpu.dot_dimension_numbers<[1], [0], [0], [1], [0, 0, 1, 1], [], []>} : vector<1x320xf32>, vector<320x50xf32>, vector<1x50xf32> -> vector<1x50xf32>
    %c0_142 = arith.constant 0 : index
    %c0_143 = arith.constant 0 : index
    %344 = vector.load %arg7[%c0_142, %c0_143] : memref<1x50xf32, #tpu.memory_space<vmem>>, vector<1x50xf32>
    %345 = arith.addf %343, %344 : vector<1x50xf32>
    %cst_144 = arith.constant 0.000000e+00 : f32
    %346 = vector.broadcast %cst_144 : f32 to vector<1x50xf32>
    %347 = arith.maximumf %345, %346 : vector<1x50xf32>
    %c0_145 = arith.constant 0 : index
    %c0_146 = arith.constant 0 : index
    %348 = vector.load %arg8[%c0_145, %c0_146] : memref<50x10xf32, #tpu.memory_space<vmem>>, vector<50x10xf32>
    %cst_147 = arith.constant dense<0.000000e+00> : vector<1x10xf32>
    %349 = tpu.matmul %347, %348, %cst_147 {dimension_numbers = #tpu.dot_dimension_numbers<[1], [0], [0], [1], [0, 0, 1, 1], [], []>} : vector<1x50xf32>, vector<50x10xf32>, vector<1x10xf32> -> vector<1x10xf32>
    %c0_148 = arith.constant 0 : index
    %c0_149 = arith.constant 0 : index
    %350 = vector.load %arg9[%c0_148, %c0_149] : memref<1x10xf32, #tpu.memory_space<vmem>>, vector<1x10xf32>
    %351 = arith.addf %349, %350 : vector<1x10xf32>
    %cst_150 = arith.constant dense<0xFF800000> : vector<1xf32>
    %352 = vector.multi_reduction <maximumf>, %351, %cst_150 [1] : vector<1x10xf32> to vector<1xf32>
    %353 = vector.shape_cast %352 : vector<1xf32> to vector<1x1xf32>
    %354 = vector.broadcast %353 : vector<1x1xf32> to vector<1x10xf32>
    %355 = arith.subf %351, %354 : vector<1x10xf32>
    %356 = math.exp %355 : vector<1x10xf32>
    %cst_151 = arith.constant dense<0.000000e+00> : vector<1xf32>
    %357 = vector.multi_reduction <add>, %356, %cst_151 [1] : vector<1x10xf32> to vector<1xf32>
    %358 = vector.shape_cast %357 : vector<1xf32> to vector<1x1xf32>
    %359 = math.log %358 : vector<1x1xf32>
    %360 = vector.broadcast %359 : vector<1x1xf32> to vector<1x10xf32>
    %361 = arith.subf %355, %360 : vector<1x10xf32>
    %c0_152 = arith.constant 0 : index
    %c0_153 = arith.constant 0 : index
    %c0_154 = arith.constant 0 : index
    %362 = vector.load %arg10[%c0_152, %c0_153, %c0_154] : memref<1x1x10xf32, #tpu.memory_space<vmem>>, vector<1x1x10xf32>
    %363 = vector.shape_cast %362 : vector<1x1x10xf32> to vector<1x10xf32>
    %364 = vector.shape_cast %361 : vector<1x10xf32> to vector<1x1x10xf32>
    tpu.vector_store %arg10[%c0_152, %c0_153, %c0_154], %364 {strides = array<i32>} : memref<1x1x10xf32, #tpu.memory_space<vmem>>, vector<1x1x10xf32>,
    return
  }
  func.func @transform_0(%arg0: i32) -> (i32, i32, i32, i32) {
    %c0_i32 = arith.constant 0 : i32
    %c0_i32_0 = arith.constant 0 : i32
    %c0_i32_1 = arith.constant 0 : i32
    %c0_i32_2 = arith.constant 0 : i32
    return %arg0, %c0_i32, %c0_i32_0, %c0_i32_1 : i32, i32, i32, i32
  }
  func.func @transform_1(%arg0: i32) -> (i32, i32, i32) {
    %c0_i32 = arith.constant 0 : i32
    %c0_i32_0 = arith.constant 0 : i32
    %c0_i32_1 = arith.constant 0 : i32
    %c0_i32_2 = arith.constant 0 : i32
    return %c0_i32, %c0_i32_0, %c0_i32_1 : i32, i32, i32
  }
  func.func @transform_2(%arg0: i32) -> (i32, i32) {
    %c0_i32 = arith.constant 0 : i32
    %c0_i32_0 = arith.constant 0 : i32
    %c0_i32_1 = arith.constant 0 : i32
    return %c0_i32, %c0_i32_0 : i32, i32
  }
  func.func @transform_3(%arg0: i32) -> (i32, i32, i32) {
    %c0_i32 = arith.constant 0 : i32
    %c0_i32_0 = arith.constant 0 : i32
    %c0_i32_1 = arith.constant 0 : i32
    %c0_i32_2 = arith.constant 0 : i32
    return %c0_i32, %c0_i32_0, %c0_i32_1 : i32, i32, i32
  }
  func.func @transform_4(%arg0: i32) -> (i32, i32) {
    %c0_i32 = arith.constant 0 : i32
    %c0_i32_0 = arith.constant 0 : i32
    %c0_i32_1 = arith.constant 0 : i32
    return %c0_i32, %c0_i32_0 : i32, i32
  }
  func.func @transform_5(%arg0: i32) -> (i32, i32) {
    %c0_i32 = arith.constant 0 : i32
    %c0_i32_0 = arith.constant 0 : i32
    %c0_i32_1 = arith.constant 0 : i32
    return %c0_i32, %c0_i32_0 : i32, i32
  }
  func.func @transform_6(%arg0: i32) -> (i32, i32) {
    %c0_i32 = arith.constant 0 : i32
    %c0_i32_0 = arith.constant 0 : i32
    %c0_i32_1 = arith.constant 0 : i32
    return %c0_i32, %c0_i32_0 : i32, i32
  }
  func.func @transform_7(%arg0: i32) -> (i32, i32) {
    %c0_i32 = arith.constant 0 : i32
    %c0_i32_0 = arith.constant 0 : i32
    %c0_i32_1 = arith.constant 0 : i32
    return %c0_i32, %c0_i32_0 : i32, i32
  }
  func.func @transform_8(%arg0: i32) -> (i32, i32) {
    %c0_i32 = arith.constant 0 : i32
    %c0_i32_0 = arith.constant 0 : i32
    %c0_i32_1 = arith.constant 0 : i32
    return %c0_i32, %c0_i32_0 : i32, i32
  }
  func.func @transform_9(%arg0: i32) -> (i32, i32, i32) {
    %c0_i32 = arith.constant 0 : i32
    %c0_i32_0 = arith.constant 0 : i32
    %c0_i32_1 = arith.constant 0 : i32
    return %arg0, %c0_i32, %c0_i32_0 : i32, i32, i32
  }
}

</mosaic_0001>

<bundles_post_ra>
// kernel: forward.1
= control target key start
LH: loop header
LB: loop body
LE: loop exit
PB: predicated region body
PF: predicated region fallthrough
CT: control target
= control target key end

     0   :  { %14 = vsyncpa [#allocation6], 0  ;;  %s4433_s0 = inlined_call_operand.vmem [shape: f32[2,1,28,28], index: 0, kind: input, shape index: {}]   ;;  %s4434_s1 = inlined_call_operand.vmem [shape: f32[5,28,240], index: 1, kind: input, shape index: {}]   ;;  %s4435_s2 = inlined_call_operand.vmem [shape: f32[1,240], index: 2, kind: input, shape index: {}]   ;;  %s4436_s3 = inlined_call_operand.vmem [shape: f32[5,120,160], index: 3, kind: input, shape index: {}]   ;;  %s4437_s4 = inlined_call_operand.vmem [shape: f32[1,160], index: 4, kind: input, shape index: {}]   ;;  %s4438_s5 = inlined_call_operand.vmem [shape: f32[320,50], index: 5, kind: input, shape index: {}]   ;;  %s4439_s6 = inlined_call_operand.vmem [shape: f32[1,50], index: 6, kind: input, shape index: {}]   ;;  %s4440_s7 = inlined_call_operand.vmem [shape: f32[50,10], index: 7, kind: input, shape index: {}]   ;;  %s4441_s8 = inlined_call_operand.vmem [shape: f32[1,10], index: 8, kind: input, shape index: {}]   ;;  %s4442_s9 = inlined_call_operand.hbm [shape: f32[2,1,10], index: 9, kind: output, shape index: {}]  }
   0x1   :  { %16 = vsyncpa [#allocation6 + $0x1], 0  ;;  %s3170_s30 = smov 0   ;;  %s3172_s10 = smov 0  }
   0x2   :  { %s3174_s11 = smov 0   ;;  %s3176_s12 = smov 0  }
   0x3 LB: > { %s3191_s13 = sadd.s32 4294967295, %s3089_s12   ;;  %s2398_s14 = sadd.s32 4294967294, %s3089_s12   ;;  %s3089_s12 = sphi %s3176_s12, %s4523_s12   ;;  %s3085_s11 = sphi %s3174_s11, %s4522_s11   ;;  %s3081_s10 = sphi %s3172_s10, %s4521_s10   ;;  %s3077_s30 = sphi %s3170_s30, %s4520_s30  }
   0x4   : > { %s3195_s15 = sadd.s32 1, %s3089_s12   ;;  %s223_s16 = sadd.s32 1, %s3085_s11 }
   0x5   : > { %s220_s17 = ssub.s32 %s3089_s12, %s3195_s15  ;;  %p233_p0 = scmp.ne.s32.totalorder %s3085_s11, %s3081_s10 }
   0x6   : > { %p221_p1 = scmp.eq.s32.totalorder %s220_s17, 0  ;;  %p234_p2 = scmp.eq.s32.totalorder %s3191_s13, 1 }
   0x7   : > { %p239_p3 = scmp.ne.s32.totalorder %s3081_s10, %s3077_s30  ;;  %p240_p4 = scmp.eq.s32.totalorder %s2398_s14, 1 }
   0x8   : > { %s3206_s18 = scalar_select %p221_p1, %s3085_s11, %s223_s16  }
   0x9   : > { %p3208_p5 = por %p234_p2, %p233_p0  ;;  %p3212_p6 = por %p240_p4, %p239_p3 }
   0xa   : > { %4453 = sst [smem:[#allocation8_spill]] %s3206_s18  ;;  %p2401_p7 = scmp.ge.s32.totalorder %s3089_s12, 1 }
   0xb   : > { %p290_p8 = scmp.lt.s32.totalorder %s3089_s12, 3 }
   0xd   : > { %p291_p9 = pnand %p2401_p7, %p290_p8 }
   0xe   : > { %v2405_v0 = vld [vmem:[%s4434_s1 + $0x48] sm:$0xff] (!%p291_p9)  ;;  %v2407_v1 = vld [vmem:[%s4434_s1 + $0x58] sm:$0xff] (!%p291_p9)  ;;  %v2404_v2 = vld [vmem:[%s4434_s1 + $0x40] sm:$0xff] (!%p291_p9)  ;;  %vm370_vm0 = vcmask (!%p291_p9), 1043456   ;;  %v3091_v7 = vmov (!%p291_p9), 0.0   ;;  %p325_p10 = scmp.lt.s32.totalorder (!%p291_p9), %s3191_s13, 1 }
   0xf   : > { %294 = sbr.rel (%p291_p9) target bundleno = 1945 (0x799), region = 56  ;;  %v2681_v3 = vpack.c.bf16 (!%p291_p9), %v2407_v1, %v2405_v0  ;;  %v2406_v4 = vld [vmem:[%s4434_s1 + $0x50] sm:$0xff] (!%p291_p9)  ;;  %v2409_v5 = vld [vmem:[%s4434_s1 + $0x68] sm:$0xff] (!%p291_p9)  ;;  %v2411_v6 = vld [vmem:[%s4434_s1 + $0x78] sm:$0xf] (!%p291_p9)  ;;  %441 = vmatprep.mubr.f32.mxu0 (!%p291_p9), %v3091_v7  ;;  %1467 = vmatprep.mubr.f32.mxu1 (!%p291_p9), %v3091_v7  ;;  %vm3092_vm1 = vmmov (!%p291_p9), 1  }
  0x10   : > { %v2683_v8 = vpack.c.bf16 (!%p291_p9), %v2406_v4, %v2404_v2  ;;  %v2685_v9 = vpack.c.bf16 (!%p291_p9), %v2411_v6, %v2409_v5  ;;  %vm3240_vm2 = vmpackc.low (!%p291_p9), %vm370_vm0, %vm3092_vm1  ;;  %v2408_v11 = vld [vmem:[%s4434_s1 + $0x60] sm:$0xff] (!%p291_p9)  ;;  %v2410_v12 = vld [vmem:[%s4434_s1 + $0x70] sm:$0xf] (!%p291_p9)  ;;  %vm355_vm3 = vcmask (!%p291_p9), 1046528   ;;  %vm363_vm4 = vcmask (!%p291_p9), 228352   ;;  %s4450_s16 = smov (!%p291_p9), 108  }
  0x11   : > { %2682 = vmatprep.subr.bf16.mxu0 (!%p291_p9), %v2681_v3  ;;  %v335_v13 = vld [vmem:[%s4434_s1 + $0x8] sm:$0xff] (!%p291_p9)  ;;  %v337_v14 = vld [vmem:[%s4434_s1 + $0x18] sm:$0xff] (!%p291_p9)  ;;  %v2688_v15 = vpack.c.bf16 (!%p291_p9), %v2410_v12, %v2408_v11  ;;  %v334_v17 = vld [vmem:[%s4434_s1] sm:$0xff] (!%p291_p9)  ;;  %vm564_vm5 = vcmask (!%p291_p9), 1045504   ;;  %vm682_vm6 = vcmask (!%p291_p9), 1044480   ;;  %vm1119_vm8 = vcmask (!%p291_p9), 80896  }
  0x12   : > { %2684 = vmatpush1.bf16.msra.mxu0 (!%p291_p9), %v2683_v8  ;;  %v2691_v16 = vpack.c.bf16 (!%p291_p9), %v337_v14, %v335_v13  ;;  %v336_v18 = vld [vmem:[%s4434_s1 + $0x10] sm:$0xff] (!%p291_p9)  ;;  %v339_v19 = vld [vmem:[%s4434_s1 + $0x28] sm:$0xff] (!%p291_p9)  ;;  %v341_v20 = vld [vmem:[%s4434_s1 + $0x38] sm:$0xf] (!%p291_p9)  ;;  %vm1121_vm9 = vcmask (!%p291_p9), 76800   ;;  %s4443_s29 = smov (!%p291_p9), 98  }
  0x13   : > { %2687 = vmatprep.subr.msk.bf16.mxu0 (!%p291_p9), %vm3240_vm2, %v2685_v9  ;;  %v2693_v26 = vpack.c.bf16 (!%p291_p9), %v336_v18, %v334_v17  ;;  %v2695_v28 = vpack.c.bf16 (!%p291_p9), %v341_v20, %v339_v19  ;;  %v338_v29 = vld [vmem:[%s4434_s1 + $0x20] sm:$0xff] (!%p291_p9)  ;;  %v340_v30 = vld [vmem:[%s4434_s1 + $0x30] sm:$0xf] (!%p291_p9)  ;;  %v2423_v33 = vld [vmem:[%s4434_s1 + $0x88] sm:$0xff] (!%p291_p9)  ;;  %s4445_s18 = smov (!%p291_p9), 88   ;;  %s4444_s28 = smov (!%p291_p9), 78  }
  0x14   : > { %v2425_v34 = vld [vmem:[%s4434_s1 + $0x98] sm:$0xff] (!%p291_p9)  ;;  %v2698_v36 = vpack.c.bf16 (!%p291_p9), %v340_v30, %v338_v29  ;;  %v2422_v40 = vld [vmem:[%s4434_s1 + $0x80] sm:$0xff] (!%p291_p9)  ;;  %v2424_v41 = vld [vmem:[%s4434_s1 + $0x90] sm:$0xff] (!%p291_p9)  ;;  %s4449_s27 = smov (!%p291_p9), 48   ;;  %s3103_s17 = smov (!%p291_p9), 28   ;;  %vm1131_vm10 = vcmask (!%p291_p9), 162896  }
  0x15   : > { %v2701_v38 = vpack.c.bf16 (!%p291_p9), %v2425_v34, %v2423_v33  ;;  %v2427_v42 = vld [vmem:[%s4434_s1 + $0xa8] sm:$0xff] (!%p291_p9)  ;;  %v2429_v43 = vld [vmem:[%s4434_s1 + $0xb8] sm:$0xf] (!%p291_p9)  ;;  %v2703_v44 = vpack.c.bf16 (!%p291_p9), %v2424_v41, %v2422_v40  ;;  %v2426_v46 = vld [vmem:[%s4434_s1 + $0xa0] sm:$0xff] (!%p291_p9)  ;;  %s3104_s21 = smov (!%p291_p9), 18   ;;  %s4461_s22 = smov (!%p291_p9), 98  }
  0x16   : > { %s326_s25 = scalar_select %p325_p10, %s3191_s13, 1  ;;  %2690 = vmatpush1.bf16.msk.msra.mxu0 %vm3240_vm2, %v2688_v15  ;;  %v2705_v45 = vpack.c.bf16 %v2429_v43, %v2427_v42  ;;  %v2428_v47 = vld [vmem:[%s4434_s1 + $0xb0] sm:$0xf]  ;;  %v2436_v48 = vld [vmem:[%s4434_s1 + $0xc8] sm:$0xff]  ;;  %v2438_v49 = vld [vmem:[%s4434_s1 + $0xd8] sm:$0xff]  ;;  %vm1141_vm11 = vcmask 244896  }
  0x17   : > { %2692 = vmatprep.subr.bf16.mxu0 %v2691_v16  ;;  %v2708_v50 = vpack.c.bf16 %v2428_v47, %v2426_v46  ;;  %v2711_v51 = vpack.c.bf16 %v2438_v49, %v2436_v48  ;;  %v2435_v54 = vld [vmem:[%s4434_s1 + $0xc0] sm:$0xff]  ;;  %v2437_v55 = vld [vmem:[%s4434_s1 + $0xd0] sm:$0xff]  ;;  %v2440_v56 = vld [vmem:[%s4434_s1 + $0xe8] sm:$0xff]  ;;  %vm1151_vm12 = vcmask 326896   ;;  %vm1161_vm13 = vcmask 408896   ;;  %s4466_s24 = smov 108  }
  0x18   : > { %s2592_s14 = sshll.u32 %s326_s25, 5  ;;  %v2442_v57 = vld [vmem:[%s4434_s1 + $0xf8] sm:$0xf]  ;;  %v2713_v59 = vpack.c.bf16 %v2437_v55, %v2435_v54  ;;  %v2439_v62 = vld [vmem:[%s4434_s1 + $0xe0] sm:$0xff]  ;;  %v2441_v63 = vld [vmem:[%s4434_s1 + $0xf0] sm:$0xf] }
  0x19   : > { %s329_s26 = scalar_lea.vmem %s4433_s0, %s2592_s14  ;;  %v2715_v61 = vpack.c.bf16 %v2442_v57, %v2440_v56  ;;  %v2449_v0 = vld [vmem:[%s4434_s1 + $0x108] sm:$0xff]  ;;  %v2451_v1 = vld [vmem:[%s4434_s1 + $0x118] sm:$0xff]  ;;  %v2718_v3 = vpack.c.bf16 %v2441_v63, %v2439_v62  ;;  %v2448_v11 = vld [vmem:[%s4434_s1 + $0x100] sm:$0xff]  ;;  %s3094_s14 = smov 118   ;;  %vm1171_vm14 = vcmask 490896   ;;  %vm1203_vm15 = vcmask 556032  }
  0x1a   : > { %v3274_v21 = vld [vmem:[%s329_s26] sm:$0xff]  ;;  %v3276_v22 = vld [vmem:[%s329_s26 + $0x8] sm:$0xff]  ;;  %v3278_v23 = vld [vmem:[%s329_s26 + $0x10] sm:$0xff]  ;;  %v2721_v5 = vpack.c.bf16 %v2451_v1, %v2449_v0  ;;  %s3099_s25 = smov 68   ;;  %vm1218_vm1 = vcmask 654896   ;;  %s2589_s23 = sshll.u32 %s3191_s13, 4 }
  0x1b   : > { %v356_v24 = vrot.slane %v3274_v21, 1  ;;  %v357_v25 = vrot.slane %v3276_v22, 1  ;;  %v359_v27 = vrot.slane %v3278_v23, 1  ;;  %v3291_v31 = vld [vmem:[%s329_s26 + $0x18] sm:$0xf]  ;;  %v565_v52 = vrot.slane %v3274_v21, 2 }
  0x1c   : > { %v361_v37 = vrot.slane %v3291_v31, 1  ;;  %v566_v53 = vrot.slane %v3276_v22, 2  ;;  %v568_v60 = vrot.slane %v3278_v23, 2  ;;  %v570_v4 = vrot.slane %v3291_v31, 2  ;;  %v2450_v12 = vld [vmem:[%s4434_s1 + $0x110] sm:$0xff]  ;;  %v2453_v13 = vld [vmem:[%s4434_s1 + $0x128] sm:$0xff] }
  0x1d   : > { %v358_v32 = vsel %vm355_vm3, %v356_v24, %v357_v25  ;;  %v360_v35 = vsel %vm355_vm3, %v357_v25, %v359_v27  ;;  %v683_v8 = vrot.slane %v3274_v21, 3  ;;  %v684_v9 = vrot.slane %v3276_v22, 3  ;;  %v2455_v14 = vld [vmem:[%s4434_s1 + $0x138] sm:$0xf]  ;;  %v2452_v19 = vld [vmem:[%s4434_s1 + $0x120] sm:$0xff]  ;;  %s3110_s26 = smov 100  }
  0x1e   : > { %2414 = vmatmul.mubr.msk.f32.vlgmr.msra.gmra.mrb[0].mxu0 %vm363_vm4, %v358_v32  ;;  %v362_v39 = vsel %vm355_vm3, %v359_v27, %v361_v37  ;;  %v567_v58 = vsel %vm564_vm5, %v565_v52, %v566_v53  ;;  %v569_v2 = vsel %vm564_vm5, %v566_v53, %v568_v60  ;;  %v571_v6 = vsel %vm564_vm5, %v568_v60, %v570_v4  ;;  %v2454_v20 = vld [vmem:[%s4434_s1 + $0x130] sm:$0xf]  ;;  %s3119_s13 = smov [#allocation5]  }
  0x1f   : > { %2694 = vmatpush1.bf16.msra.mxu0 %v2693_v26  ;;  %447 = vmatprep.mubr.f32.mxu0 %v3091_v7  ;;  %v685_v15 = vsel %vm682_vm6, %v683_v8, %v684_v9  ;;  %v2723_v16 = vpack.c.bf16 %v2450_v12, %v2448_v11  ;;  %v686_v17 = vrot.slane %v3278_v23, 3  ;;  %v2725_v18 = vpack.c.bf16 %v2455_v14, %v2453_v13 }
  0x20   : > { %2697 = vmatprep.subr.msk.bf16.mxu0 %vm3240_vm2, %v2695_v28  ;;  %v2728_v25 = vpack.c.bf16 %v2454_v20, %v2452_v19  ;;  %v688_v26 = vrot.slane %v3291_v31, 3  ;;  %v800_v28 = vrot.slane %v3274_v21, 4  ;;  %v801_v29 = vrot.slane %v3276_v22, 4 }
  0x21   : > { %v687_v24 = vsel %vm682_vm6, %v684_v9, %v686_v17  ;;  %v803_v32 = vrot.slane %v3278_v23, 4  ;;  %v805_v33 = vrot.slane %v3291_v31, 4  ;;  %v908_v31 = vld [vmem:[%s4435_s2] sm:$0x3]  ;;  %v3093_v37 = vmov 1966171168  }
  0x22   : > { %2415 = vmatmul.mubr.msk.f32.gmra.mrb[2].mxu0 %vm363_vm4, %v360_v35  ;;  %v689_v27 = vsel %vm682_vm6, %v686_v17, %v688_v26  ;;  %v802_v30 = vsel %vm370_vm0, %v800_v28, %v801_v29  ;;  %vm1238_vm3 = vcmask 818896   ;;  %vm1258_vm5 = vcmask 982896  }
  0x23   : > { %453 = vmatprep.mubr.f32.mxu0 %v3091_v7  ;;  %2700 = vmatpush1.bf16.msk.msra.mxu0 %vm3240_vm2, %v2698_v36  ;;  %v804_v10 = vsel %vm370_vm0, %v801_v29, %v803_v32  ;;  %vm1133_vm6 = vcmask 158800  }
  0x24   : > { %2702 = vmatprep.subr.bf16.mxu0 %v2701_v38  ;;  %v938_v38 = vunpack.c.l.s4 %v3093_v37  ;;  %v1266_v37 = vld [vmem:[%s4436_s3 + $0x18] sm:$0xff] }
  0x26   : > { %2416 = vmatmul.mubr.msk.f32.gmra.mrb[4].mxu0 %vm363_vm4, %v362_v39  ;;  %v939_v43 = vunpack.c.0.s8 %v938_v38  ;;  %v1263_v38 = vld [vmem:[%s4436_s3] sm:$0xff] }
  0x27   : > { %536 = vmatprep.mubr.f32.mxu0 %v3091_v7 }
  0x2a   : > { %2419 = vmatmul.mubr.msk.f32.vlgmr.msra.gmra.mrb[0].mxu0 %vm363_vm4, %v3274_v21  ;;  %v806_v21 = vsel %vm370_vm0, %v803_v32, %v805_v33  ;;  %vm1208_vm0 = vcmask 572896  }
  0x2b   : > { %2704 = vmatpush1.bf16.msra.mxu0 %v2703_v44  ;;  %542 = vmatprep.mubr.f32.mxu0 %v3091_v7 }
  0x2c   : > { %2707 = vmatprep.subr.msk.bf16.mxu0 %vm3240_vm2, %v2705_v45 }
  0x2e   : > { %2420 = vmatmul.mubr.msk.f32.gmra.mrb[2].mxu0 %vm363_vm4, %v3276_v22  ;;  %v910_v22 = vlaneseq }
  0x2f   : > { %548 = vmatprep.mubr.f32.mxu0 %v3091_v7  ;;  %2710 = vmatpush1.bf16.msk.msra.mxu0 %vm3240_vm2, %v2708_v50 }
  0x30   : > { %2712 = vmatprep.subr.bf16.mxu0 %v2711_v51  ;;  %vm3459_vm7 = vcmp.lt.s32.totalorder %v910_v22, 240 }
  0x32   : > { %2421 = vmatmul.mubr.msk.f32.gmra.mrb[4].mxu0 %vm363_vm4, %v3278_v23  ;;  %v3440_v23 = vshrl.u32 %v910_v22, 7 }
  0x33   : > { %648 = vmatprep.mubr.f32.mxu0 %v3091_v7 }
  0x34   : > { %v3443_v34 = vsub.s32 0, %v3440_v23  ;;  %v3449_v35 = vsub.s32 1, %v3440_v23  ;;  %v3454_v51 = vsub.s32 %v939_v43, %v3440_v23  ;;  %v1270_v43 = vld [vmem:[%s4436_s3 + $0x38] sm:$0xff] }
  0x36   : > { %2432 = vmatmul.mubr.msk.f32.vlgmr.msra.gmra.mrb[0].mxu0 %vm363_vm4, %v567_v58  ;;  %v913_v36 = vrot.slane %v908_v31, %v3443_v34  ;;  %v917_v39 = vrot.slane %v908_v31, %v3449_v35 }
  0x37   : > { %2714 = vmatpush1.bf16.msra.mxu0 %v2713_v59  ;;  %654 = vmatprep.mubr.f32.mxu0 %v3091_v7 }
  0x38   : > { %2717 = vmatprep.subr.msk.bf16.mxu0 %vm3240_vm2, %v2715_v61 }
  0x3a   : > { %2433 = vmatmul.mubr.msk.f32.gmra.mrb[2].mxu0 %vm363_vm4, %v569_v2  ;;  %v1282_v2 = vld [vmem:[%s4436_s3 + $0x98] sm:$0xff] }
  0x3b   : > { %660 = vmatprep.mubr.f32.mxu0 %v3091_v7  ;;  %2720 = vmatpush1.bf16.msk.msra.mxu0 %vm3240_vm2, %v2718_v3 }
  0x3c   : > { %2722 = vmatprep.subr.bf16.mxu0 %v2721_v5 }
  0x3e   : > { %2434 = vmatmul.mubr.msk.f32.gmra.mrb[4].mxu0 %vm363_vm4, %v571_v6 }
  0x3f   : > { %766 = vmatprep.mubr.f32.mxu0 %v3091_v7 }
  0x42   : > { %2445 = vmatmul.mubr.msk.f32.vlgmr.msra.gmra.mrb[0].mxu0 %vm363_vm4, %v685_v15 }
  0x43   : > { %2724 = vmatpush1.bf16.msra.mxu0 %v2723_v16  ;;  %772 = vmatprep.mubr.f32.mxu0 %v3091_v7 }
  0x44   : > { %2727 = vmatprep.subr.msk.bf16.mxu0 %vm3240_vm2, %v2725_v18 }
  0x46   : > { %2446 = vmatmul.mubr.msk.f32.gmra.mrb[2].mxu0 %vm363_vm4, %v687_v24 }
  0x47   : > { %778 = vmatprep.mubr.f32.mxu0 %v3091_v7  ;;  %2730 = vmatpush1.bf16.msk.msra.mxu0 %vm3240_vm2, %v2728_v25  ;;  %vm1228_vm2 = vcmask 736896  }
  0x4a   : > { %2447 = vmatmul.mubr.msk.f32.gmra.mrb[4].mxu0 %vm363_vm4, %v689_v27 }
  0x4b   : > { %883 = vmatprep.mubr.f32.mxu0 %v3091_v7 }
  0x4e   : > { %2458 = vmatmul.mubr.msk.f32.vlgmr.msra.gmra.mrb[0].mxu0 %vm363_vm4, %v802_v30 }
  0x4f   : > { %889 = vmatprep.mubr.f32.mxu0 %v3091_v7 }
  0x52   : > { %2459 = vmatmul.mubr.msk.f32.gmra.mrb[2].mxu0 %vm363_vm4, %v804_v10 }
  0x53   : > { %895 = vmatprep.mubr.f32.mxu0 %v3091_v7 }
  0x56   : > { %2460 = vmatmul.mubr.msk.f32.gmra.mrb[4].mxu0 %vm363_vm4, %v806_v21  ;;  %vm1248_vm4 = vcmask 900896  }
  0x57   : > { %1393 = vmatprep.mubr.f32.mxu0 %v3091_v7 }
 0x121   : > { %v885_v40 = vpop.f32.mrb[0].mxu0 }
 0x122   : > { %v920_v41 = vadd.f32 %v913_v36, %v885_v40  ;;  %v887_v42 = vpop.f32.mrb[1].mxu0  ;;  %v1265_v40 = vld [vmem:[%s4436_s3 + $0x10] sm:$0xff] }
 0x123   : > { %v921_v44 = vadd.f32 %v917_v39, %v887_v42  ;;  %v1268_v42 = vld [vmem:[%s4436_s3 + $0x28] sm:$0xff] }
 0x124   : > { %v928_v45 = vrot.slane %v920_v41, 1 }
 0x125   : > { %v929_v46 = vrot.slane %v921_v44, 1  ;;  %v891_v47 = vpop.f32.mrb[2].mxu0 }
 0x126   : > { %v932_v48 = vmax.f32 %v920_v41, %v928_v45  ;;  %v922_v49 = vadd.f32 %v913_v36, %v891_v47  ;;  %v893_v50 = vpop.f32.mrb[3].mxu0  ;;  %v2761_v41 = vpack.c.bf16 %v1265_v40, %v1263_v38  ;;  %v1267_v45 = vld [vmem:[%s4436_s3 + $0x20] sm:$0xff]  ;;  %v2466_v40 = vld [vmem:[%s4436_s3 + $0x118] sm:$0xff] }
 0x127   : > { %v933_v52 = vmax.f32 %v921_v44, %v929_v46  ;;  %v923_v53 = vadd.f32 %v917_v39, %v893_v50  ;;  %v2763_v44 = vpack.c.bf16 %v1270_v43, %v1268_v42  ;;  %v1269_v46 = vld [vmem:[%s4436_s3 + $0x30] sm:$0xff]  ;;  %v1291_v42 = vld [vmem:[%s4436_s3 + $0xe0] sm:$0xff] }
 0x128   : > { %v989_v54 = vrot.slane %v922_v49, 1  ;;  %v2765_v47 = vpack.c.bf16 %v1269_v46, %v1267_v45  ;;  %v2465_v43 = vld [vmem:[%s4436_s3 + $0x110] sm:$0xff]  ;;  %v2467_v45 = vld [vmem:[%s4436_s3 + $0x120] sm:$0xff]  ;;  %v2494_v46 = vld [vmem:[%s4436_s3 + $0x1e8] sm:$0xff] }
 0x129   : > { %v936_v55 = vcombine.low %v932_v48, %v933_v52  ;;  %v963_v56 = vcombine.high %v932_v48, %v933_v52  ;;  %v990_v57 = vrot.slane %v923_v53, 1  ;;  %v897_v58 = vpop.f32.mrb[4].mxu0  ;;  %v1272_v48 = vld [vmem:[%s4436_s3 + $0x48] sm:$0xff]  ;;  %v1271_v52 = vld [vmem:[%s4436_s3 + $0x40] sm:$0xff] }
 0x12a   : > { %v993_v59 = vmax.f32 %v922_v49, %v989_v54  ;;  %v924_v60 = vadd.f32 %v913_v36, %v897_v58  ;;  %v899_v61 = vpop.f32.mrb[5].mxu0  ;;  %v1264_v36 = vld [vmem:[%s4436_s3 + $0x8] sm:$0xff]  ;;  %v1274_v49 = vld [vmem:[%s4436_s3 + $0x58] sm:$0xff]  ;;  %v1275_v58 = vld [vmem:[%s4436_s3 + $0x60] sm:$0xff] }
 0x12b   : > { %v943_v62 = vrot.slane %v936_v55, %v3454_v51  ;;  %v970_v63 = vrot.slane %v963_v56, %v3454_v51  ;;  %v994_v0 = vmax.f32 %v923_v53, %v990_v57  ;;  %v925_v1 = vadd.f32 %v917_v39, %v899_v61  ;;  %v1273_v53 = vld [vmem:[%s4436_s3 + $0x50] sm:$0xff]  ;;  %v1276_v56 = vld [vmem:[%s4436_s3 + $0x68] sm:$0xff]  ;;  %v1278_v57 = vld [vmem:[%s4436_s3 + $0x78] sm:$0xff] }
 0x12c   : > { %v1047_v3 = vrot.slane %v924_v60, 1  ;;  %v2759_v39 = vpack.c.bf16 %v1266_v37, %v1264_v36  ;;  %v2767_v50 = vpack.c.bf16 %v1274_v49, %v1272_v48  ;;  %v2769_v54 = vpack.c.bf16 %v1273_v53, %v1271_v52  ;;  %v1277_v61 = vld [vmem:[%s4436_s3 + $0x70] sm:$0xff]  ;;  %v2463_v37 = vld [vmem:[%s4436_s3 + $0x100] sm:$0xff]  ;;  %v2472_v52 = vld [vmem:[%s4436_s3 + $0x148] sm:$0xff] }
 0x12d   : > { %v950_v4 = vrot.slane %v943_v62, %v3454_v51  ;;  %v977_v5 = vrot.slane %v970_v63, %v3454_v51  ;;  %v997_v6 = vcombine.low %v993_v59, %v994_v0  ;;  %v1021_v8 = vcombine.high %v993_v59, %v994_v0 }
 0x12e   : > { %v1051_v9 = vmax.f32 %v924_v60, %v1047_v3  ;;  %v1048_v11 = vrot.slane %v925_v1, 1  ;;  %2760 = vmatprep.subr.bf16.mxu1 %v2759_v39  ;;  %v2771_v60 = vpack.c.bf16 %v1278_v57, %v1276_v56  ;;  %v2773_v62 = vpack.c.bf16 %v1277_v61, %v1275_v58  ;;  %v1292_v39 = vld [vmem:[%s4436_s3 + $0xe8] sm:$0xff]  ;;  %v2474_v57 = vld [vmem:[%s4436_s3 + $0x158] sm:$0xff]  ;;  %v2475_v61 = vld [vmem:[%s4436_s3 + $0x160] sm:$0xff] }
 0x12f   : > { %956 = vst.msk [vmem:[#allocation2] ss:$8 sm:$0x3] %vm3459_vm7, %v950_v4  ;;  %v958_v12 = vcombine.high %v950_v4, %v950_v4  ;;  %980 = vst.msk [vmem:[#allocation2 + $0x2] ss:$8 sm:$0x3] %vm3459_vm7, %v977_v5  ;;  %v982_v13 = vcombine.high %v977_v5, %v977_v5  ;;  %v1004_v14 = vrot.slane %v997_v6, %v3454_v51  ;;  %2762 = vmatpush1.bf16.msra.mxu1 %v2761_v41 }
 0x130   : > { %v1028_v15 = vrot.slane %v1021_v8, %v3454_v51  ;;  %v1052_v16 = vmax.f32 %v925_v1, %v1048_v11  ;;  %2764 = vmatprep.subr.bf16.mxu1 %v2763_v44  ;;  %v1280_v1 = vld [vmem:[%s4436_s3 + $0x88] sm:$0xff]  ;;  %v1279_v5 = vld [vmem:[%s4436_s3 + $0x80] sm:$0xff]  ;;  %v1281_v6 = vld [vmem:[%s4436_s3 + $0x90] sm:$0xff]  ;;  %v2737_v48 = vpack.c.bf16 %v2467_v45, %v2465_v43 }
 0x131   : > { %961 = vst.msk [vmem:[#allocation2 + $0x1] ss:$8 sm:$0x3] %vm3459_vm7, %v958_v12  ;;  %985 = vst.msk [vmem:[#allocation2 + $0x3] ss:$8 sm:$0x3] %vm3459_vm7, %v982_v13  ;;  %v1011_v17 = vrot.slane %v1004_v14, %v3454_v51  ;;  %v2775_v4 = vpack.c.bf16 %v1282_v2, %v1280_v1 }
 0x132   : > { %v1035_v18 = vrot.slane %v1028_v15, %v3454_v51  ;;  %v1055_v19 = vcombine.low %v1051_v9, %v1052_v16  ;;  %v1079_v20 = vcombine.high %v1051_v9, %v1052_v16  ;;  %v2777_v9 = vpack.c.bf16 %v1281_v6, %v1279_v5  ;;  %v1284_v13 = vld [vmem:[%s4436_s3 + $0xa8] sm:$0xff]  ;;  %v1286_v14 = vld [vmem:[%s4436_s3 + $0xb8] sm:$0xff]  ;;  %v1283_v16 = vld [vmem:[%s4436_s3 + $0xa0] sm:$0xff] }
 0x133   : > { %1014 = vst.msk [vmem:[#allocation2 + $0x4] ss:$8 sm:$0x3] %vm3459_vm7, %v1011_v17  ;;  %v1016_v24 = vcombine.high %v1011_v17, %v1011_v17  ;;  %2766 = vmatpush1.bf16.msra.mxu1 %v2765_v47  ;;  %v2779_v15 = vpack.c.bf16 %v1286_v14, %v1284_v13  ;;  %v1285_v17 = vld [vmem:[%s4436_s3 + $0xb0] sm:$0xff]  ;;  %v2468_v41 = vld [vmem:[%s4436_s3 + $0x128] sm:$0xff]  ;;  %v2496_v47 = vld [vmem:[%s4436_s3 + $0x1f8] sm:$0xff] }
 0x134   : > { %1038 = vst.msk [vmem:[#allocation2 + $0x6] ss:$8 sm:$0x3] %vm3459_vm7, %v1035_v18  ;;  %v1040_v25 = vcombine.high %v1035_v18, %v1035_v18  ;;  %v1062_v26 = vrot.slane %v1055_v19, %v3454_v51  ;;  %v1086_v27 = vrot.slane %v1079_v20, %v3454_v51  ;;  %2768 = vmatprep.subr.bf16.mxu1 %v2767_v50  ;;  %v2470_v50 = vld [vmem:[%s4436_s3 + $0x138] sm:$0xff]  ;;  %v2476_v58 = vld [vmem:[%s4436_s3 + $0x168] sm:$0xff]  ;;  %v2483_v13 = vld [vmem:[%s4436_s3 + $0x1a0] sm:$0xff] }
 0x135   : > { %1019 = vst.msk [vmem:[#allocation2 + $0x5] ss:$8 sm:$0x3] %vm3459_vm7, %v1016_v24  ;;  %v2781_v18 = vpack.c.bf16 %v1285_v17, %v1283_v16  ;;  %v1288_v24 = vld [vmem:[%s4436_s3 + $0xc8] sm:$0xff]  ;;  %v2735_v44 = vpack.c.bf16 %v2468_v41, %v2466_v40  ;;  %v2787_v49 = vpack.c.bf16 %v2496_v47, %v2494_v46  ;;  %v2739_v53 = vpack.c.bf16 %v2472_v52, %v2470_v50  ;;  %v2486_v17 = vld [vmem:[%s4436_s3 + $0x1b8] sm:$0xff]  ;;  %v2495_v45 = vld [vmem:[%s4436_s3 + $0x1f0] sm:$0xff] }
 0x136   : > { %1043 = vst.msk [vmem:[#allocation2 + $0x7] ss:$8 sm:$0x3] %vm3459_vm7, %v1040_v25  ;;  %v1069_v28 = vrot.slane %v1062_v26, %v3454_v51  ;;  %v1093_v29 = vrot.slane %v1086_v27, %v3454_v51  ;;  %v1290_v25 = vld [vmem:[%s4436_s3 + $0xd8] sm:$0xff]  ;;  %v2480_v1 = vld [vmem:[%s4436_s3 + $0x188] sm:$0xff] }
 0x137   : > { %2770 = vmatpush1.bf16.msra.mxu1 %v2769_v54  ;;  %v2783_v26 = vpack.c.bf16 %v1290_v25, %v1288_v24  ;;  %v2462_v27 = vld [vmem:[%s4436_s3 + $0xf8] sm:$0xff]  ;;  %v2469_v54 = vld [vmem:[%s4436_s3 + $0x130] sm:$0xff]  ;;  %v2498_v46 = vld [vmem:[%s4436_s3 + $0x208] sm:$0xff] }
 0x138   : > { %1072 = vst.msk [vmem:[#allocation2 + $0x10] ss:$8 sm:$0x3] %vm3459_vm7, %v1069_v28  ;;  %v1074_v30 = vcombine.high %v1069_v28, %v1069_v28  ;;  %1096 = vst.msk [vmem:[#allocation2 + $0x12] ss:$8 sm:$0x3] %vm3459_vm7, %v1093_v29  ;;  %v1098_v32 = vcombine.high %v1093_v29, %v1093_v29  ;;  %2772 = vmatprep.subr.bf16.mxu1 %v2771_v60 }
 0x139   : > { %v2464_v28 = vld [vmem:[%s4436_s3 + $0x108] sm:$0xff]  ;;  %v2473_v60 = vld [vmem:[%s4436_s3 + $0x150] sm:$0xff]  ;;  %v2490_v25 = vld [vmem:[%s4436_s3 + $0x1d8] sm:$0xff] }
 0x13a   : > { %1077 = vst.msk [vmem:[#allocation2 + $0x11] ss:$8 sm:$0x3] %vm3459_vm7, %v1074_v30  ;;  %1101 = vst.msk [vmem:[#allocation2 + $0x13] ss:$8 sm:$0x3] %vm3459_vm7, %v1098_v32  ;;  %v2731_v29 = vpack.c.bf16 %v2464_v28, %v2462_v27 }
 0x13b   : > { %2774 = vmatpush1.bf16.msra.mxu1 %v2773_v62  ;;  %v1287_v30 = vld [vmem:[%s4436_s3 + $0xc0] sm:$0xff]  ;;  %v1289_v32 = vld [vmem:[%s4436_s3 + $0xd0] sm:$0xff]  ;;  %v2745_v62 = vpack.c.bf16 %v2475_v61, %v2473_v60  ;;  %vm1143_vm7 = vcmask 240800   ;;  %v2500_v47 = vld [vmem:[%s4436_s3 + $0x218] sm:$0xff] }
 0x13c   : > { %2776 = vmatprep.subr.bf16.mxu1 %v2775_v4  ;;  %v2785_v36 = vpack.c.bf16 %v1289_v32, %v1287_v30  ;;  %2732 = vmatprep.subr.bf16.mxu0 %v2731_v29  ;;  %v2479_v4 = vld [vmem:[%s4436_s3 + $0x180] sm:$0xff]  ;;  %v2791_v52 = vpack.c.bf16 %v2500_v47, %v2498_v46 }
 0x13d   : > { %v3497_v10 = vld [vmem:[#allocation2] sm:$0xff]  ;;  %v3501_v33 = vld [vmem:[#allocation2 + $0x8] sm:$0xff] }
 0x13e   : > { %1109 = vrot.lane.b32.xlu0 %v3497_v10, %s3094_s14 }
 0x13f   : > { %2778 = vmatpush1.bf16.msra.mxu1 %v2777_v9  ;;  %v2484_v9 = vld [vmem:[%s4436_s3 + $0x1a8] sm:$0xff] }
 0x140   : > { %2780 = vmatprep.subr.bf16.mxu1 %v2779_v15 }
 0x141   : > { %v3505_v21 = vld [vmem:[#allocation2 + $0x10] sm:$0xf]  ;;  %v3509_v31 = vld [vmem:[#allocation2 + $0x18] sm:$0xf] }
 0x142   : > { %1177 = vrot.lane.b32.xlu0 %v3501_v33, %s3094_s14  ;;  %1111 = vrot.lane.b32.xlu1 %v3505_v21, %s3094_s14 }
 0x143   : > { %2782 = vmatpush1.bf16.msra.mxu1 %v2781_v18  ;;  %v2488_v18 = vld [vmem:[%s4436_s3 + $0x1c8] sm:$0xff] }
 0x144   : > { %2784 = vmatprep.subr.bf16.mxu1 %v2783_v26  ;;  %v2489_v26 = vld [vmem:[%s4436_s3 + $0x1d0] sm:$0xff] }
 0x146   : > { %1179 = vrot.lane.b32.xlu1 %v3509_v31, %s3094_s14 }
 0x147   : > { %2786 = vmatpush1.bf16.msra.mxu1 %v2785_v36 }
 0x148   : > { %1431 = vmatprep.subr.mxu1 %v1292_v39 }
 0x14b   : > { %1432 = vmatpush1.msra.mxu1 %v1291_v42 }
 0x14c   : > { %2788 = vmatprep.subr.bf16.mxu1 %v2787_v49 }
 0x1b0   : > { %v1110_v55 = vpop.permute.xlu0 %1109 }
 0x1b1   : > { %v1115_v59 = vmax.f32 %v3497_v10, %v1110_v55  ;;  %v2471_v55 = vld [vmem:[%s4436_s3 + $0x140] sm:$0xff] }
 0x1b2   : > { %v2741_v56 = vpack.c.bf16 %v2471_v55, %v2469_v54  ;;  %v2499_v54 = vld [vmem:[%s4436_s3 + $0x210] sm:$0xff] }
 0x1b3   : > { %v1117_v63 = vmax.f32 %v1115_v59, 0.0  ;;  %v2743_v59 = vpack.c.bf16 %v2476_v58, %v2474_v57  ;;  %v2504_v57 = vld [vmem:[%s4436_s3 + $0x238] sm:$0xff] }
 0x1b4   : > { %v1178_v0 = vpop.permute.xlu0 %1177  ;;  %v1112_v3 = vpop.permute.xlu1 %1111 }
 0x1b5   : > { %1125 = vrot.lane.b32.xlu0 %v1117_v63, %s3094_s14  ;;  %1135 = vrot.lane.b32.xlu1 %v1117_v63, %s4450_s16  ;;  %1120 = vst.msk [vmem:[#allocation3] sm:$0xff] %vm1119_vm8, %v1117_v63  ;;  %v1116_v8 = vmax.f32 %v3505_v21, %v1112_v3  ;;  %v1183_v11 = vmax.f32 %v3497_v10, %v1178_v0  ;;  %v2461_v10 = vld [vmem:[%s4436_s3 + $0xf0] sm:$0xff]  ;;  %vm1153_vm8 = vcmask 322800  }
 0x1b6   : > { %v1184_v19 = vmax.f32 %v3501_v33, %v1178_v0  ;;  %v2733_v38 = vpack.c.bf16 %v2463_v37, %v2461_v10  ;;  %v2478_v0 = vld [vmem:[%s4436_s3 + $0x178] sm:$0xff]  ;;  %v2477_v3 = vld [vmem:[%s4436_s3 + $0x170] sm:$0xff] }
 0x1b7   : > { %v3578_v12 = vmax.f32 %v1116_v8, 0.0  ;;  %v1187_v20 = vmax.f32 %v1183_v11, 0.0  ;;  %v2747_v2 = vpack.c.bf16 %v2480_v1, %v2478_v0  ;;  %v2749_v6 = vpack.c.bf16 %v2479_v4, %v2477_v3  ;;  %v2482_v8 = vld [vmem:[%s4436_s3 + $0x198] sm:$0xff]  ;;  %v2506_v0 = vld [vmem:[%s4436_s3 + $0x248] sm:$0xff] }
 0x1b8   : > { %v1188_v33 = vmax.f32 %v1184_v19, 0.0  ;;  %2734 = vmatpush1.bf16.msra.mxu0 %v2733_v38  ;;  %v2751_v11 = vpack.c.bf16 %v2484_v9, %v2482_v8  ;;  %v2755_v19 = vpack.c.bf16 %v2488_v18, %v2486_v17  ;;  %v2508_v1 = vld [vmem:[%s4436_s3 + $0x258] sm:$0xff]  ;;  %v2507_v8 = vld [vmem:[%s4436_s3 + $0x250] sm:$0xff]  ;;  %v2509_v17 = vld [vmem:[%s4436_s3 + $0x260] sm:$0xff] }
 0x1b9   : > { %1145 = vrot.lane.b32.xlu0 %v1117_v63, %s4443_s29  ;;  %1155 = vrot.lane.b32.xlu1 %v1117_v63, %s4445_s18  ;;  %1122 = vst.msk [vmem:[#allocation3 + $0x8] sm:$0xf] %vm1121_vm9, %v3578_v12  ;;  %s4447_s29 = smov 58   ;;  %vm1163_vm9 = vcmask 404800   ;;  %v2511_v18 = vld [vmem:[%s4436_s3 + $0x270] sm:$0xff]  ;;  %s3114_s18 = smov 52  }
 0x1ba   : > { %2736 = vmatprep.subr.bf16.mxu0 %v2735_v44  ;;  %v2493_v44 = vld [vmem:[%s4436_s3 + $0x1e0] sm:$0xff] }
 0x1bc   : > { %2738 = vmatpush1.bf16.msra.mxu0 %v2737_v48  ;;  %v2789_v48 = vpack.c.bf16 %v2495_v45, %v2493_v44  ;;  %v2531_v44 = vld [vmem:[%s4436_s3 + $0x308] sm:$0xff]  ;;  %v2521_v45 = vld [vmem:[%s4436_s3 + $0x2c0] sm:$0xff] }
 0x1bd   : > { %1165 = vrot.lane.b32.xlu0 %v1117_v63, %s4444_s28  ;;  %1195 = vrot.lane.b32.xlu1 %v1187_v20, %s3099_s25  ;;  %v1180_v63 = vpop.permute.xlu1 %1179  ;;  %v2487_v20 = vld [vmem:[%s4436_s3 + $0x1c0] sm:$0xff]  ;;  %s3109_s28 = smov 20  }
 0x1be   : > { %2740 = vmatprep.subr.bf16.mxu0 %v2739_v53  ;;  %v1185_v5 = vmax.f32 %v3505_v21, %v1180_v63  ;;  %v2481_v21 = vld [vmem:[%s4436_s3 + $0x190] sm:$0xff]  ;;  %v1186_v14 = vmax.f32 %v3509_v31, %v1180_v63  ;;  %v2497_v53 = vld [vmem:[%s4436_s3 + $0x200] sm:$0xff] }
 0x1bf   : > { %v2753_v16 = vpack.c.bf16 %v2483_v13, %v2481_v21  ;;  %v2485_v31 = vld [vmem:[%s4436_s3 + $0x1b0] sm:$0xff]  ;;  %v2793_v58 = vpack.c.bf16 %v2499_v54, %v2497_v53  ;;  %v2512_v21 = vld [vmem:[%s4436_s3 + $0x278] sm:$0xff]  ;;  %v2535_v54 = vld [vmem:[%s4436_s3 + $0x328] sm:$0xff] }
 0x1c0   : > { %2742 = vmatpush1.bf16.msra.mxu0 %v2741_v56  ;;  %v1189_v15 = vmax.f32 %v1185_v5, 0.0  ;;  %v2757_v24 = vpack.c.bf16 %v2487_v20, %v2485_v31  ;;  %v2502_v56 = vld [vmem:[%s4436_s3 + $0x228] sm:$0xff]  ;;  %v2503_v63 = vld [vmem:[%s4436_s3 + $0x230] sm:$0xff]  ;;  %v2799_v5 = vpack.c.bf16 %v2508_v1, %v2506_v0  ;;  %v2516_v31 = vld [vmem:[%s4436_s3 + $0x298] sm:$0xff]  ;;  %v2805_v20 = vpack.c.bf16 %v2511_v18, %v2509_v17 }
 0x1c1   : > { %1197 = vrot.lane.b32.xlu0 %v1188_v33, %s3099_s25  ;;  %1212 = vrot.lane.b32.xlu1 %v1188_v33, %s4447_s29  ;;  %s4448_s29 = smov 38   ;;  %v2795_v61 = vpack.c.bf16 %v2504_v57, %v2502_v56  ;;  %v2533_v53 = vld [vmem:[%s4436_s3 + $0x318] sm:$0xff]  ;;  %v2532_v57 = vld [vmem:[%s4436_s3 + $0x310] sm:$0xff] }
 0x1c2   : > { %2744 = vmatprep.subr.bf16.mxu0 %v2743_v59  ;;  %v2823_v56 = vpack.c.bf16 %v2535_v54, %v2533_v53  ;;  %v2538_v0 = vld [vmem:[%s4436_s3 + $0x340] sm:$0xff]  ;;  %v2541_v1 = vld [vmem:[%s4436_s3 + $0x358] sm:$0xff] }
 0x1c3   : > { %v2574_v53 = vld [vmem:[%s4436_s3 + $0x458] sm:$0xff] }
 0x1c4   : > { %2746 = vmatpush1.bf16.msra.mxu0 %v2745_v62  ;;  %v2501_v62 = vld [vmem:[%s4436_s3 + $0x220] sm:$0xff] }
 0x1c5   : > { %1222 = vrot.lane.b32.xlu0 %v1188_v33, %s4449_s27  ;;  %1232 = vrot.lane.b32.xlu1 %v1188_v33, %s4448_s29  ;;  %s4465_s29 = smov 38   ;;  %s3117_s27 = smov 72  }
 0x1c6   : > { %2748 = vmatprep.subr.bf16.mxu0 %v2747_v2  ;;  %v2797_v2 = vpack.c.bf16 %v2503_v63, %v2501_v62  ;;  %v2536_v63 = vld [vmem:[%s4436_s3 + $0x330] sm:$0xff] }
 0x1c8   : > { %2750 = vmatpush1.bf16.msra.mxu0 %v2749_v6  ;;  %v2505_v6 = vld [vmem:[%s4436_s3 + $0x240] sm:$0xff] }
 0x1c9   : > { %1242 = vrot.lane.b32.xlu0 %v1188_v33, %s3103_s17  ;;  %1252 = vrot.lane.b32.xlu1 %v1188_v33, %s3104_s21  ;;  %v2801_v13 = vpack.c.bf16 %v2507_v8, %v2505_v6  ;;  %v2542_v6 = vld [vmem:[%s4436_s3 + $0x360] sm:$0xff]  ;;  %v2545_v8 = vld [vmem:[%s4436_s3 + $0x378] sm:$0xff] }
 0x1ca   : > { %2752 = vmatprep.subr.bf16.mxu0 %v2751_v11  ;;  %v2510_v11 = vld [vmem:[%s4436_s3 + $0x268] sm:$0xff] }
 0x1cc   : > { %2754 = vmatpush1.bf16.msra.mxu0 %v2753_v16  ;;  %v2803_v16 = vpack.c.bf16 %v2512_v21, %v2510_v11 }
 0x1cd   : > { %1137 = vrot.lane.b32.xlu1 %v3578_v12, %s4450_s16  ;;  %1127 = vrot.lane.b32.xlu0 %v3578_v12, %s3094_s14  ;;  %s4460_s14 = smov 88   ;;  %s4464_s16 = smov 48  }
 0x1ce   : > { %2756 = vmatprep.subr.bf16.mxu0 %v2755_v19  ;;  %v2514_v19 = vld [vmem:[%s4436_s3 + $0x288] sm:$0xff] }
 0x1d0   : > { %2758 = vmatpush1.bf16.msra.mxu0 %v2757_v24 }
 0x1d1   : > { %1157 = vrot.lane.b32.xlu1 %v3578_v12, %s4460_s14  ;;  %1147 = vrot.lane.b32.xlu0 %v3578_v12, %s4461_s22  ;;  %s4462_s22 = smov 78  }
 0x1d2   : > { %1357 = vmatprep.subr.mxu0 %v2490_v25  ;;  %v2807_v25 = vpack.c.bf16 %v2516_v31, %v2514_v19  ;;  %v2548_v19 = vld [vmem:[%s4436_s3 + $0x390] sm:$0xff]  ;;  %v2550_v31 = vld [vmem:[%s4436_s3 + $0x3a0] sm:$0xff] }
 0x1d4   : > { %1358 = vmatpush1.msra.mxu0 %v2489_v26  ;;  %v2513_v26 = vld [vmem:[%s4436_s3 + $0x280] sm:$0xff] }
 0x1d5   : > { %1167 = vrot.lane.b32.xlu0 %v3578_v12, %s4462_s22  ;;  %1199 = vrot.lane.b32.xlu1 %v1189_v15, %s3099_s25  ;;  %v1190_v12 = vmax.f32 %v1186_v14, 0.0  ;;  %s4463_s22 = smov 58  }
 0x1d9   : > { %1201 = vrot.lane.b32.xlu0 %v1190_v12, %s3099_s25  ;;  %1214 = vrot.lane.b32.xlu1 %v1190_v12, %s4463_s22  ;;  %s3111_s22 = smov 12  }
 0x1dd   : > { %1224 = vrot.lane.b32.xlu0 %v1190_v12, %s4464_s16  ;;  %1234 = vrot.lane.b32.xlu1 %v1190_v12, %s4465_s29  ;;  %s3105_s16 = smov 40   ;;  %s3106_s29 = smov 80  }
 0x1e1   : > { %1244 = vrot.lane.b32.xlu0 %v1190_v12, %s3103_s17  ;;  %1254 = vrot.lane.b32.xlu1 %v1190_v12, %s3104_s21  ;;  %s3112_s17 = smov 112  }
 0x227   : > { %v1126_v27 = vpop.permute.xlu0 %1125  ;;  %v1136_v28 = vpop.permute.xlu1 %1135 }
 0x228   : > { %1132 = vst.msk [vmem:[#allocation3] sm:$0xff] %vm1131_vm10, %v1126_v27  ;;  %vm1325_vm10 = vcmask 982016   ;;  %v2515_v27 = vld [vmem:[%s4436_s3 + $0x290] sm:$0xff] }
 0x229   : > { %1142 = vst.msk [vmem:[#allocation3] sm:$0xff] %vm1141_vm11, %v1136_v28  ;;  %vm1173_vm11 = vcmask 486800   ;;  %v2518_v28 = vld [vmem:[%s4436_s3 + $0x2a8] sm:$0xff] }
 0x22b   : > { %v1146_v29 = vpop.permute.xlu0 %1145  ;;  %v1156_v30 = vpop.permute.xlu1 %1155 }
 0x22c   : > { %1152 = vst.msk [vmem:[#allocation3] sm:$0xff] %vm1151_vm12, %v1146_v29  ;;  %vm1210_vm12 = vcmask 568800   ;;  %v2520_v29 = vld [vmem:[%s4436_s3 + $0x2b8] sm:$0xff] }
 0x22d   : > { %1162 = vst.msk [vmem:[#allocation3] sm:$0xff] %vm1161_vm13, %v1156_v30  ;;  %vm1220_vm13 = vcmask 650800   ;;  %v2809_v30 = vpack.c.bf16 %v2515_v27, %v2513_v26  ;;  %v2555_v26 = vld [vmem:[%s4436_s3 + $0x3c0] sm:$0xff]  ;;  %v2557_v27 = vld [vmem:[%s4436_s3 + $0x3d0] sm:$0xff] }
 0x22f   : > { %v1166_v32 = vpop.permute.xlu0 %1165  ;;  %v1196_v10 = vpop.permute.xlu1 %1195 }
 0x230   : > { %1172 = vst.msk [vmem:[#allocation3] sm:$0xff] %vm1171_vm14, %v1166_v32  ;;  %vm1230_vm14 = vcmask 732800   ;;  %v2811_v32 = vpack.c.bf16 %v2520_v29, %v2518_v28  ;;  %v2560_v28 = vld [vmem:[%s4436_s3 + $0x3e8] sm:$0xff]  ;;  %v2562_v29 = vld [vmem:[%s4436_s3 + $0x3f8] sm:$0xff] }
 0x233   : > { %v1198_v33 = vpop.permute.xlu0 %1197  ;;  %v1213_v36 = vpop.permute.xlu1 %1212 }
 0x234   : > { %v1204_v37 = vsel %vm1203_vm15, %v1196_v10, %v1198_v33  ;;  %v2517_v10 = vld [vmem:[%s4436_s3 + $0x2a0] sm:$0xff]  ;;  %v2519_v33 = vld [vmem:[%s4436_s3 + $0x2b0] sm:$0xff] }
 0x235   : > { %1209 = vst.msk [vmem:[#allocation3] sm:$0xff] %vm1208_vm0, %v1204_v37  ;;  %vm1240_vm0 = vcmask 814800   ;;  %v2522_v37 = vld [vmem:[%s4436_s3 + $0x2c8] sm:$0xff] }
 0x236   : > { %1219 = vst.msk [vmem:[#allocation3] sm:$0xff] %vm1218_vm1, %v1213_v36  ;;  %vm1250_vm1 = vcmask 896800   ;;  %v2813_v36 = vpack.c.bf16 %v2519_v33, %v2517_v10  ;;  %v2845_v10 = vpack.c.bf16 %v2557_v27, %v2555_v26  ;;  %v2847_v33 = vpack.c.bf16 %v2562_v29, %v2560_v28 }
 0x237   : > { %v1223_v38 = vpop.permute.xlu0 %1222  ;;  %v1233_v39 = vpop.permute.xlu1 %1232 }
 0x238   : > { %1229 = vst.msk [vmem:[#allocation3] sm:$0xff] %vm1228_vm2, %v1223_v38  ;;  %vm1260_vm2 = vcmask 978800  }
 0x239   : > { %1239 = vst.msk [vmem:[#allocation3] sm:$0xff] %vm1238_vm3, %v1233_v39  ;;  %v2525_v39 = vld [vmem:[%s4436_s3 + $0x2d8] sm:$0xff]  ;;  %vm1822_vm3 = vcmp.lt.s32.totalorder %v910_v22, 20 }
 0x23b   : > { %v1243_v40 = vpop.permute.xlu0 %1242  ;;  %v1253_v41 = vpop.permute.xlu1 %1252 }
 0x23c   : > { %1249 = vst.msk [vmem:[#allocation3] sm:$0xff] %vm1248_vm4, %v1243_v40  ;;  %v2527_v40 = vld [vmem:[%s4436_s3 + $0x2e8] sm:$0xff]  ;;  %vm4452_vm4 = vmmov 0  }
 0x23d   : > { %1259 = vst.msk [vmem:[#allocation3] sm:$0xff] %vm1258_vm5, %v1253_v41  ;;  %v2524_v41 = vld [vmem:[%s4436_s3 + $0x2d0] sm:$0xff]  ;;  %v2815_v46 = vpack.c.bf16 %v2527_v40, %v2525_v39  ;;  %v2564_v39 = vld [vmem:[%s4436_s3 + $0x408] sm:$0xff]  ;;  %v2566_v40 = vld [vmem:[%s4436_s3 + $0x418] sm:$0xff]  ;;  %vm1843_vm5 = vcmp.ge.s32.totalorder %v910_v22, 20 }
 0x23f   : > { %v1128_v42 = vpop.permute.xlu0 %1127  ;;  %v1138_v43 = vpop.permute.xlu1 %1137 }
 0x240   : > { %1134 = vst.msk [vmem:[#allocation3 + $0x8] sm:$0xf] %vm1133_vm6, %v1128_v42  ;;  %v2526_v42 = vld [vmem:[%s4436_s3 + $0x2e0] sm:$0xff]  ;;  %vm1844_vm6 = vcmp.lt.s32.totalorder %v910_v22, 40 }
 0x241   : > { %1144 = vst.msk [vmem:[#allocation3 + $0x8] sm:$0xf] %vm1143_vm7, %v1138_v43  ;;  %v2529_v43 = vld [vmem:[%s4436_s3 + $0x2f8] sm:$0xff]  ;;  %v2817_v47 = vpack.c.bf16 %v2526_v42, %v2524_v41  ;;  %v2851_v42 = vpack.c.bf16 %v2566_v40, %v2564_v39  ;;  %v2031_v39 = vld [vmem:[%s4438_s5 + $0x8] sm:$0xff]  ;;  %vm1850_vm7 = vcmp.ge.s32.totalorder %v910_v22, 40 }
 0x243   : > { %v1148_v49 = vpop.permute.xlu0 %1147  ;;  %v1158_v50 = vpop.permute.xlu1 %1157 }
 0x244   : > { %1154 = vst.msk [vmem:[#allocation3 + $0x8] sm:$0xf] %vm1153_vm8, %v1148_v49  ;;  %v1262_v55 = vld [vmem:[#allocation3] sm:$0xff]  ;;  %v2528_v49 = vld [vmem:[%s4436_s3 + $0x2f0] sm:$0xff]  ;;  %vm1851_vm8 = vcmp.lt.s32.totalorder %v910_v22, 60 }
 0x245   : > { %1164 = vst.msk [vmem:[#allocation3 + $0x8] sm:$0xf] %vm1163_vm9, %v1158_v50  ;;  %2492 = vmatmul.mubr.msk.f32.vlgmr.msra.gmra.mrb[0].mxu1 %vm1325_vm10, %v1262_v55  ;;  %v2530_v50 = vld [vmem:[%s4436_s3 + $0x300] sm:$0xff]  ;;  %vm1845_vm9 = vmand %vm1843_vm5, %vm1844_vm6  ;;  %vm4174_vm5 = vcmp.lt.s32.totalorder %v910_v22, 140  ;;  %vm1914_vm6 = vcmask 326656  }
 0x246   : > { %2790 = vmatpush1.bf16.msra.mxu1 %v2789_v48  ;;  %1573 = vmatprep.mubr.f32.mxu1 %v3091_v7  ;;  %v2819_v48 = vpack.c.bf16 %v2531_v44, %v2529_v43  ;;  %v2821_v55 = vpack.c.bf16 %v2530_v50, %v2528_v49  ;;  %v2563_v43 = vld [vmem:[%s4436_s3 + $0x400] sm:$0xff]  ;;  %v2565_v44 = vld [vmem:[%s4436_s3 + $0x410] sm:$0xff] }
 0x247   : > { %v1168_v59 = vpop.permute.xlu0 %1167  ;;  %v1200_v60 = vpop.permute.xlu1 %1199  ;;  %2792 = vmatprep.subr.bf16.mxu1 %v2791_v52  ;;  %v2567_v49 = vld [vmem:[%s4436_s3 + $0x420] sm:$0xff]  ;;  %v2569_v50 = vld [vmem:[%s4436_s3 + $0x430] sm:$0xff] }
 0x248   : > { %1174 = vst.msk [vmem:[#allocation3 + $0x8] sm:$0xf] %vm1173_vm11, %v1168_v59  ;;  %v2537_v59 = vld [vmem:[%s4436_s3 + $0x338] sm:$0xff]  ;;  %v2857_v54 = vpack.c.bf16 %v2569_v50, %v2567_v49  ;;  %v2032_v50 = vld [vmem:[%s4438_s5 + $0x10] sm:$0xff]  ;;  %vm4135_vm11 = vcmp.ge.s32.totalorder %v910_v22, 60 }
 0x24a   : > { %2794 = vmatpush1.bf16.msra.mxu1 %v2793_v58  ;;  %v2534_v58 = vld [vmem:[%s4436_s3 + $0x320] sm:$0xff] }
 0x24b   : > { %v1202_v3 = vpop.permute.xlu0 %1201  ;;  %v1215_v4 = vpop.permute.xlu1 %1214  ;;  %2796 = vmatprep.subr.bf16.mxu1 %v2795_v61  ;;  %v2825_v61 = vpack.c.bf16 %v2534_v58, %v2532_v57  ;;  %v2573_v57 = vld [vmem:[%s4436_s3 + $0x450] sm:$0xff]  ;;  %v2576_v58 = vld [vmem:[%s4436_s3 + $0x468] sm:$0xff] }
 0x24c   : > { %v1205_v9 = vsel %vm1203_vm15, %v1200_v60, %v1202_v3  ;;  %v2539_v60 = vld [vmem:[%s4436_s3 + $0x348] sm:$0xff]  ;;  %v2829_v3 = vpack.c.bf16 %v2538_v0, %v2536_v63  ;;  %v2577_v63 = vld [vmem:[%s4436_s3 + $0x470] sm:$0xff] }
 0x24d   : > { %1211 = vst.msk [vmem:[#allocation3 + $0x8] sm:$0xf] %vm1210_vm12, %v1205_v9  ;;  %v2827_v62 = vpack.c.bf16 %v2539_v60, %v2537_v59  ;;  %v2547_v9 = vld [vmem:[%s4436_s3 + $0x388] sm:$0xff]  ;;  %v2578_v59 = vld [vmem:[%s4436_s3 + $0x478] sm:$0xff]  ;;  %vm4140_vm12 = vcmp.lt.s32.totalorder %v910_v22, 80 }
 0x24e   : > { %1221 = vst.msk [vmem:[#allocation3 + $0x8] sm:$0xf] %vm1220_vm13, %v1215_v4  ;;  %2798 = vmatpush1.bf16.msra.mxu1 %v2797_v2  ;;  %v2543_v2 = vld [vmem:[%s4436_s3 + $0x368] sm:$0xff]  ;;  %v2835_v21 = vpack.c.bf16 %v2547_v9, %v2545_v8  ;;  %v2583_v9 = vld [vmem:[%s4436_s3 + $0x4a0] sm:$0xff]  ;;  %vm4145_vm13 = vcmp.ge.s32.totalorder %v910_v22, 80 }
 0x24f   : > { %v1225_v14 = vpop.permute.xlu0 %1224  ;;  %v1235_v15 = vpop.permute.xlu1 %1234  ;;  %2800 = vmatprep.subr.bf16.mxu1 %v2799_v5  ;;  %v2831_v4 = vpack.c.bf16 %v2543_v2, %v2541_v1  ;;  %v2540_v5 = vld [vmem:[%s4436_s3 + $0x350] sm:$0xff]  ;;  %v2580_v0 = vld [vmem:[%s4436_s3 + $0x488] sm:$0xff]  ;;  %v2582_v1 = vld [vmem:[%s4436_s3 + $0x498] sm:$0xff] }
 0x250   : > { %1231 = vst.msk [vmem:[#allocation3 + $0x8] sm:$0xf] %vm1230_vm14, %v1225_v14  ;;  %v2833_v11 = vpack.c.bf16 %v2542_v6, %v2540_v5  ;;  %v2546_v14 = vld [vmem:[%s4436_s3 + $0x380] sm:$0xff]  ;;  %v2581_v5 = vld [vmem:[%s4436_s3 + $0x490] sm:$0xff]  ;;  %v2584_v8 = vld [vmem:[%s4436_s3 + $0x4a8] sm:$0xff]  ;;  %vm4150_vm14 = vcmp.lt.s32.totalorder %v910_v22, 100 }
 0x251   : > { %1241 = vst.msk [vmem:[#allocation3 + $0x8] sm:$0xf] %vm1240_vm0, %v1235_v15  ;;  %v2549_v15 = vld [vmem:[%s4436_s3 + $0x398] sm:$0xff]  ;;  %vm4155_vm0 = vcmp.ge.s32.totalorder %v910_v22, 100 }
 0x252   : > { %2802 = vmatpush1.bf16.msra.mxu1 %v2801_v13  ;;  %v2544_v13 = vld [vmem:[%s4436_s3 + $0x370] sm:$0xff] }
 0x253   : > { %v1245_v12 = vpop.permute.xlu0 %1244  ;;  %v1255_v24 = vpop.permute.xlu1 %1254  ;;  %2804 = vmatprep.subr.bf16.mxu1 %v2803_v16  ;;  %v2551_v16 = vld [vmem:[%s4436_s3 + $0x3a8] sm:$0xff]  ;;  %v2837_v17 = vpack.c.bf16 %v2546_v14, %v2544_v13  ;;  %v1798_v14 = vld [vmem:[%s4437_s4] sm:$0x3] }
 0x254   : > { %1251 = vst.msk [vmem:[#allocation3 + $0x8] sm:$0xf] %vm1250_vm1, %v1245_v12  ;;  %v2839_v18 = vpack.c.bf16 %v2551_v16, %v2549_v15  ;;  %v2553_v12 = vld [vmem:[%s4436_s3 + $0x3b8] sm:$0xff]  ;;  %v1803_v15 = vrot.slane %v1798_v14, %v3443_v34  ;;  %vm4160_vm1 = vcmp.lt.s32.totalorder %v910_v22, 120 }
 0x255   : > { %1261 = vst.msk [vmem:[#allocation3 + $0x8] sm:$0xf] %vm1260_vm2, %v1255_v24  ;;  %v2556_v24 = vld [vmem:[%s4436_s3 + $0x3c8] sm:$0xff]  ;;  %vm1894_vm2 = vmand %vm4135_vm11, %vm4140_vm12  ;;  %vm4198_vm11 = vcmp.ge.s32.totalorder %v910_v22, 32  ;;  %vm4203_vm12 = vcmp.lt.s32.totalorder %v910_v22, 52 }
 0x256   : > { %2806 = vmatpush1.bf16.msra.mxu1 %v2805_v20  ;;  %v2841_v20 = vpack.c.bf16 %v2550_v31, %v2548_v19 }
 0x257   : > { %2808 = vmatprep.subr.bf16.mxu1 %v2807_v25  ;;  %v2558_v25 = vld [vmem:[%s4436_s3 + $0x3d8] sm:$0xff] }
 0x25a   : > { %2810 = vmatpush1.bf16.msra.mxu1 %v2809_v30  ;;  %v2552_v30 = vld [vmem:[%s4436_s3 + $0x3b0] sm:$0xff] }
 0x25b   : > { %2812 = vmatprep.subr.bf16.mxu1 %v2811_v32  ;;  %v2843_v32 = vpack.c.bf16 %v2558_v25, %v2556_v24 }
 0x25c   : > { %v1293_v38 = vld [vmem:[#allocation3 + $0x1] sm:$0xff] }
 0x25d   : > { %2491 = vmatmul.mubr.msk.f32.vlgmr.msra.gmra.mrb[6].mxu0 %vm1325_vm10, %v1293_v38  ;;  %v1474_v52 = vld [vmem:[#allocation3 + $0x2] sm:$0xff] }
 0x25e   : > { %2814 = vmatpush1.bf16.msra.mxu1 %v2813_v36  ;;  %v2559_v36 = vld [vmem:[%s4436_s3 + $0x3e0] sm:$0xff] }
 0x25f   : > { %1537 = vmatprep.subr.mxu1 %v2522_v37  ;;  %v2561_v37 = vld [vmem:[%s4436_s3 + $0x3f0] sm:$0xff]  ;;  %v1582_v38 = vld [vmem:[#allocation3 + $0x3] sm:$0xff] }
 0x260   : > { %v2849_v41 = vpack.c.bf16 %v2561_v37, %v2559_v36 }
 0x262   : > { %1538 = vmatpush1.msra.mxu1 %v2521_v45  ;;  %v2568_v45 = vld [vmem:[%s4436_s3 + $0x428] sm:$0xff] }
 0x263   : > { %2523 = vmatmul.mubr.msk.f32.vlgmr.msra.gmra.mrb[0].mxu1 %vm1325_vm10, %v1474_v52  ;;  %2816 = vmatprep.subr.bf16.mxu1 %v2815_v46  ;;  %v2570_v46 = vld [vmem:[%s4436_s3 + $0x438] sm:$0xff]  ;;  %v2572_v52 = vld [vmem:[%s4436_s3 + $0x448] sm:$0xff] }
 0x264   : > { %2818 = vmatpush1.bf16.msra.mxu1 %v2817_v47  ;;  %1681 = vmatprep.mubr.f32.mxu1 %v3091_v7  ;;  %v2853_v47 = vpack.c.bf16 %v2565_v44, %v2563_v43  ;;  %v2048_v44 = vld [vmem:[%s4438_s5 + $0x90] sm:$0xff] }
 0x265   : > { %2820 = vmatprep.subr.bf16.mxu1 %v2819_v48  ;;  %v2855_v48 = vpack.c.bf16 %v2570_v46, %v2568_v45  ;;  %v2049_v45 = vld [vmem:[%s4438_s5 + $0x98] sm:$0xff] }
 0x268   : > { %2822 = vmatpush1.bf16.msra.mxu1 %v2821_v55  ;;  %v2859_v55 = vpack.c.bf16 %v2574_v53, %v2572_v52  ;;  %v2033_v52 = vld [vmem:[%s4438_s5 + $0x18] sm:$0xff] }
 0x269   : > { %2824 = vmatprep.subr.bf16.mxu1 %v2823_v56  ;;  %v2571_v56 = vld [vmem:[%s4436_s3 + $0x440] sm:$0xff]  ;;  %v2877_v53 = vpack.c.bf16 %v2033_v52, %v2032_v50 }
 0x26a   : > { %v2861_v60 = vpack.c.bf16 %v2573_v57, %v2571_v56  ;;  %v2050_v57 = vld [vmem:[%s4438_s5 + $0xa0] sm:$0xff] }
 0x26b   : > { %v2230_v52 = vld [vmem:[%s4440_s7] sm:$0xff] }
 0x26c   : > { %2826 = vmatpush1.bf16.msra.mxu1 %v2825_v61  ;;  %v2863_v61 = vpack.c.bf16 %v2578_v59, %v2576_v58  ;;  %v2051_v58 = vld [vmem:[%s4438_s5 + $0xa8] sm:$0xff] }
 0x26d   : > { %2828 = vmatprep.subr.bf16.mxu1 %v2827_v62  ;;  %v2575_v62 = vld [vmem:[%s4436_s3 + $0x460] sm:$0xff] }
 0x26e   : > { %v2865_v2 = vpack.c.bf16 %v2577_v63, %v2575_v62  ;;  %v2879_v62 = vpack.c.bf16 %v2051_v58, %v2050_v57  ;;  %v2034_v63 = vld [vmem:[%s4438_s5 + $0x20] sm:$0xff]  ;;  %v2235_v58 = vld [vmem:[%s4440_s7 + $0x28] sm:$0xff] }
 0x26f   : > { %v2234_v57 = vld [vmem:[%s4440_s7 + $0x20] sm:$0xff] }
 0x270   : > { %2830 = vmatpush1.bf16.msra.mxu1 %v2829_v3  ;;  %v2867_v3 = vpack.c.bf16 %v2582_v1, %v2580_v0  ;;  %v2035_v0 = vld [vmem:[%s4438_s5 + $0x28] sm:$0xff]  ;;  %v2052_v1 = vld [vmem:[%s4438_s5 + $0xb0] sm:$0xff] }
 0x271   : > { %2832 = vmatprep.subr.bf16.mxu1 %v2831_v4  ;;  %v2579_v4 = vld [vmem:[%s4436_s3 + $0x480] sm:$0xff] }
 0x272   : > { %v2869_v6 = vpack.c.bf16 %v2581_v5, %v2579_v4  ;;  %v2037_v4 = vld [vmem:[%s4438_s5 + $0x38] sm:$0xff]  ;;  %v2881_v5 = vpack.c.bf16 %v2035_v0, %v2034_v63 }
 0x274   : > { %2834 = vmatpush1.bf16.msra.mxu1 %v2833_v11  ;;  %v1690_v11 = vld [vmem:[#allocation3 + $0x4] sm:$0xff] }
 0x275   : > { %2836 = vmatprep.subr.bf16.mxu1 %v2835_v21 }
 0x278   : > { %2838 = vmatpush1.bf16.msra.mxu1 %v2837_v17  ;;  %v1807_v17 = vrot.slane %v1798_v14, %v3449_v35  ;;  %v2055_v14 = vld [vmem:[%s4438_s5 + $0xc8] sm:$0xff] }
 0x279   : > { %2840 = vmatprep.subr.bf16.mxu1 %v2839_v18 }
 0x27c   : > { %2842 = vmatpush1.bf16.msra.mxu1 %v2841_v20 }
 0x27d   : > { %1645 = vmatprep.subr.mxu1 %v2553_v12 }
 0x280   : > { %1646 = vmatpush1.msra.mxu1 %v2552_v30 }
 0x281   : > { %2554 = vmatmul.mubr.msk.f32.vlgmr.msra.gmra.mrb[0].mxu1 %vm1325_vm10, %v1582_v38  ;;  %2844 = vmatprep.subr.bf16.mxu1 %v2843_v32  ;;  %v2030_v38 = vld [vmem:[%s4438_s5] sm:$0xff] }
 0x282   : > { %2846 = vmatpush1.bf16.msra.mxu1 %v2845_v10  ;;  %1789 = vmatprep.mubr.f32.mxu1 %v3091_v7  ;;  %v2046_v10 = vld [vmem:[%s4438_s5 + $0x80] sm:$0xff] }
 0x283   : > { %2848 = vmatprep.subr.bf16.mxu1 %v2847_v33  ;;  %v2047_v33 = vld [vmem:[%s4438_s5 + $0x88] sm:$0xff] }
 0x284   : > { %v2871_v37 = vpack.c.bf16 %v2047_v33, %v2046_v10 }
 0x286   : > { %2850 = vmatpush1.bf16.msra.mxu1 %v2849_v41  ;;  %2872 = vmatprep.subr.bf16.mxu0 %v2871_v37  ;;  %v2061_v37 = vld [vmem:[%s4438_s5 + $0xf8] sm:$0xff] }
 0x287   : > { %2852 = vmatprep.subr.bf16.mxu1 %v2851_v42  ;;  %v2873_v42 = vpack.c.bf16 %v2031_v39, %v2030_v38  ;;  %v2044_v39 = vld [vmem:[%s4438_s5 + $0x70] sm:$0xff] }
 0x289   : > { %2874 = vmatpush3.bf16.msra.mxu0 %v2873_v42 }
 0x28a   : > { %2854 = vmatpush1.bf16.msra.mxu1 %v2853_v47 }
 0x28b   : > { %2856 = vmatprep.subr.bf16.mxu1 %v2855_v48  ;;  %v2875_v48 = vpack.c.bf16 %v2049_v45, %v2048_v44  ;;  %v3116_v44 = vmov 0.0|0.0  }
 0x28d   : > { %2876 = vmatprep.subr.bf16.mxu0 %v2875_v48 }
 0x28e   : > { %2858 = vmatpush1.bf16.msra.mxu1 %v2857_v54  ;;  %2878 = vmatpush3.bf16.msra.mxu0 %v2877_v53  ;;  %v2231_v53 = vld [vmem:[%s4440_s7 + $0x8] sm:$0xff] }
 0x28f   : > { %2860 = vmatprep.subr.bf16.mxu1 %v2859_v55  ;;  %2880 = vmatprep.subr.bf16.mxu0 %v2879_v62 }
 0x292   : > { %2862 = vmatpush1.bf16.msra.mxu1 %v2861_v60  ;;  %2882 = vmatpush3.bf16.msra.mxu0 %v2881_v5 }
 0x293   : > { %2864 = vmatprep.subr.bf16.mxu1 %v2863_v61 }
 0x296   : > { %2866 = vmatpush1.bf16.msra.mxu1 %v2865_v2  ;;  %v2053_v2 = vld [vmem:[%s4438_s5 + $0xb8] sm:$0xff] }
 0x297   : > { %2868 = vmatprep.subr.bf16.mxu1 %v2867_v3  ;;  %v2036_v3 = vld [vmem:[%s4438_s5 + $0x30] sm:$0xff] }
 0x29a   : > { %2870 = vmatpush1.bf16.msra.mxu1 %v2869_v6 }
 0x29b   : > { %1753 = vmatprep.subr.mxu1 %v2584_v8 }
 0x29e   : > { %1754 = vmatpush1.msra.mxu1 %v2583_v9 }
 0x29f   : > { %2585 = vmatmul.mubr.msk.f32.vlgmr.msra.gmra.mrb[0].mxu1 %vm1325_vm10, %v1690_v11  ;;  %v2883_v11 = vpack.c.bf16 %v2053_v2, %v2052_v1  ;;  %2915 = vmatprep.subr.bf16.mxu1 %v3116_v44  ;;  %vm1852_vm10 = vmand %vm1850_vm7, %vm1851_vm8  ;;  %vm4183_vm8 = vcmp.ge.s32.totalorder %v910_v22, 12 }
 0x2a0   : > { %2678 = vmatprep.mubr.msk.f32.mxu1 %vm4452_vm4, %v3091_v7  ;;  %vm1902_vm7 = vmand %vm4145_vm13, %vm4150_vm14  ;;  %vm4212_vm4 = vcmp.ge.s32.totalorder %v910_v22, 52  ;;  %vm4226_vm14 = vcmp.ge.s32.totalorder %v910_v22, 72  ;;  %vm4231_vm13 = vcmp.lt.s32.totalorder %v910_v22, 92 }
 0x2a1   : > { %2884 = vmatprep.subr.bf16.mxu0 %v2883_v11 }
 0x330   : > { %v1395_v21 = vpop.f32.mrb[6].mxu0 }
 0x331   : > { %v1397_v13 = vpop.f32.mrb[7].mxu0 }
 0x372   : > { %v1791_v16 = vpop.f32.mrb[0].mxu1 }
 0x373   : > { %v2924_v18 = vadd.f32 %v1791_v16, %v1395_v21  ;;  %v1793_v19 = vpop.f32.mrb[1].mxu1  ;;  %v2885_v21 = vpack.c.bf16 %v2037_v4, %v2036_v3  ;;  %v2039_v16 = vld [vmem:[%s4438_s5 + $0x48] sm:$0xff] }
 0x374   : > { %v2925_v31 = vadd.f32 %v1793_v19, %v1397_v13  ;;  %v2054_v13 = vld [vmem:[%s4438_s5 + $0xc0] sm:$0xff] }
 0x375   : > { %v1810_v20 = vadd.f32 %v2924_v18, %v1803_v15  ;;  %v2038_v15 = vld [vmem:[%s4438_s5 + $0x40] sm:$0xff]  ;;  %2886 = vmatpush3.bf16.msra.mxu0 %v2885_v21 }
 0x376   : > { %v1811_v12 = vadd.f32 %v2925_v31, %v1807_v17  ;;  %v2887_v17 = vpack.c.bf16 %v2055_v14, %v2054_v13  ;;  %v2889_v31 = vpack.c.bf16 %v2039_v16, %v2038_v15 }
 0x377   : > { %1813 = vrot.lane.b32.xlu1 %v1810_v20, %s4466_s24 }
 0x378   : > { %1855 = vrot.lane.b32.xlu0 %v1811_v12, %s4466_s24  ;;  %2888 = vmatprep.subr.bf16.mxu0 %v2887_v17 }
 0x379   : > { %2890 = vmatpush3.bf16.msra.mxu0 %v2889_v31 }
 0x3e9   : > { %v1814_v24 = vpop.permute.xlu1 %1813 }
 0x3ea   : > { %v1816_v25 = vmax.f32 %v1810_v20, %v1814_v24  ;;  %v1856_v26 = vpop.permute.xlu0 %1855  ;;  %v2040_v24 = vld [vmem:[%s4438_s5 + $0x50] sm:$0xff] }
 0x3eb   : > { %v1858_v27 = vmax.f32 %v1810_v20, %v1856_v26  ;;  %v1859_v28 = vmax.f32 %v1811_v12, %v1856_v26  ;;  %v2056_v20 = vld [vmem:[%s4438_s5 + $0xd0] sm:$0xff]  ;;  %v2057_v12 = vld [vmem:[%s4438_s5 + $0xd8] sm:$0xff] }
 0x3ec   : > { %v1818_v29 = vrot.slane %v1816_v25, 1  ;;  %v2891_v26 = vpack.c.bf16 %v2057_v12, %v2056_v20 }
 0x3ed   : > { %v1862_v30 = vrot.slane %v1858_v27, 1  ;;  %v1863_v32 = vrot.slane %v1859_v28, 1 }
 0x3ee   : > { %v1820_v36 = vmax.f32 %v1816_v25, %v1818_v29  ;;  %v2041_v25 = vld [vmem:[%s4438_s5 + $0x58] sm:$0xff]  ;;  %v2058_v29 = vld [vmem:[%s4438_s5 + $0xe0] sm:$0xff]  ;;  %2892 = vmatprep.subr.bf16.mxu0 %v2891_v26 }
 0x3ef   : > { %v1866_v40 = vmax.f32 %v1858_v27, %v1862_v30  ;;  %v1867_v41 = vmax.f32 %v1859_v28, %v1863_v32  ;;  %v2893_v28 = vpack.c.bf16 %v2041_v25, %v2040_v24  ;;  %v2059_v30 = vld [vmem:[%s4438_s5 + $0xe8] sm:$0xff]  ;;  %v2042_v32 = vld [vmem:[%s4438_s5 + $0x60] sm:$0xff]  ;;  %v4509_v24 = vmov 0 }
 0x3f0   : > { %v1821_v43 = vmax.f32 %v1820_v36, 0.0  ;;  %v2895_v10 = vpack.c.bf16 %v2059_v30, %v2058_v29  ;;  %v2060_v36 = vld [vmem:[%s4438_s5 + $0xf0] sm:$0xff] }
 0x3f1   : > { %v1868_v46 = vmax.f32 %v1866_v40, 0.0  ;;  %v1869_v47 = vmax.f32 %v1867_v41, 0.0  ;;  %2894 = vmatpush3.bf16.msra.mxu0 %v2893_v28  ;;  %v2045_v40 = vld [vmem:[%s4438_s5 + $0x78] sm:$0xff]  ;;  %v2899_v41 = vpack.c.bf16 %v2061_v37, %v2060_v36  ;;  %v2062_v36 = vld [vmem:[%s4438_s5 + $0x100] sm:$0xff] }
 0x3f2   : > { %v1832_v49 = vrot.slane %v1821_v43, %v3454_v51  ;;  %1824 = vst.msk [vmem:[#allocation4] sm:$0x1] %vm1822_vm3, %v1821_v43  ;;  %v1932_v54 = vcombine.high %v1821_v43, %v1821_v43  ;;  %2896 = vmatprep.subr.bf16.mxu0 %v2895_v10  ;;  %v2901_v43 = vpack.c.bf16 %v2045_v40, %v2044_v39  ;;  %vm4169_vm3 = vcmp.ge.s32.totalorder %v910_v22, 120 }
 0x3f3   : > { %v1872_v55 = vcombine.low %v1868_v46, %v1869_v47  ;;  %v1968_v6 = vcombine.high %v1868_v46, %v1869_v47 }
 0x3f4   : > { %v1839_v56 = vrot.slane %v1832_v49, %v3454_v51  ;;  %v1939_v60 = vrot.slane %v1932_v54, %v3454_v51  ;;  %v2232_v54 = vld [vmem:[%s4440_s7 + $0x10] sm:$0xff] }
 0x3f5   : > { %v1879_v61 = vrot.slane %v1872_v55, %v3454_v51  ;;  %v1975_v19 = vrot.slane %v1968_v6, %v3454_v51  ;;  %v2916_v55 = vpack.c.bf16 %v2231_v53, %v2230_v52 }
 0x3f6   : > { %1840 = vrot.lane.b32.xlu1 %v1839_v56, %s4466_s24  ;;  %1847 = vrot.lane.b32.xlu0 %v1839_v56, %s4460_s14  ;;  %v1896_v59 = vcombine.high %v1839_v56, %v1839_v56  ;;  %v1946_v8 = vrot.slane %v1939_v60, %v3454_v51  ;;  %s3107_s24 = smov 32   ;;  %s3108_s14 = smov 60  }
 0x3f7   : > { %v1886_v9 = vrot.slane %v1879_v61, %v3454_v51  ;;  %v1982_v27 = vrot.slane %v1975_v19, %v3454_v51  ;;  %v2043_v51 = vld [vmem:[%s4438_s5 + $0x68] sm:$0xff]  ;;  %2917 = vmatpush3.bf16.msra.mxu1 %v2916_v55 }
 0x3f8   : > { %v1993_v33 = vcombine.high %v1946_v8, %v1946_v8  ;;  %v2897_v38 = vpack.c.bf16 %v2043_v51, %v2042_v32  ;;  %2918 = vmatprep.subr.bf16.mxu1 %v3116_v44 }
 0x3f9   : > { %v1921_v18 = vcombine.high %v1886_v9, %v1886_v9  ;;  %v2018_v42 = vcombine.high %v1982_v27, %v1982_v27 }
 0x3fa   : > { %1911 = vrot.lane.b32.xlu1 %v1896_v59, %s3105_s16  ;;  %1897 = vrot.lane.b32.xlu0 %v1896_v59, %s3106_s29 }
 0x3fb   : > { %2898 = vmatpush3.bf16.msra.mxu0 %v2897_v38 }
 0x3fc   : > { %2900 = vmatprep.subr.bf16.mxu0 %v2899_v41  ;;  %v2064_v41 = vld [vmem:[%s4438_s5 + $0x110] sm:$0xff] }
 0x3fe   : > { %1947 = vrot.lane.b32.xlu1 %v1946_v8, %s3107_s24  ;;  %1904 = vrot.lane.b32.xlu0 %v1896_v59, %s3108_s14  ;;  %s4390_s14 = scalar_lea.hbm %s4442_s9, %s2589_s23 }
 0x3ff   : > { %2902 = vmatpush3.bf16.msra.mxu0 %v2901_v43 }
 0x400   : > { %2903 = vmatprep.subr.bf16.mxu0 %v3116_v44 }
 0x402   : > { %1887 = vrot.lane.b32.xlu0 %v1886_v9, %s3099_s25  ;;  %1922 = vrot.lane.b32.xlu1 %v1921_v18, %s3109_s28  ;;  %s3113_s25 = smov 120   ;;  %s3115_s28 = smov 92  }
 0x406   : > { %1983 = vrot.lane.b32.xlu0 %v1982_v27, %s3110_s26  ;;  %1954 = vrot.lane.b32.xlu1 %v1946_v8, %s3111_s22  ;;  %s323_s22 = sand.u32 1, %s3081_s10  }
 0x407   : > { %s2331_s16 = scalar_lea.sflag [#allocation6], %s323_s22 }
 0x40a   : > { %1994 = vrot.lane.b32.xlu0 %v1993_v33, %s3112_s17  ;;  %1961 = vrot.lane.b32.xlu1 %v1946_v8, %s3113_s25  ;;  %s3031_s17 = sshll.u32 %s3119_s13, 4  ;;  %s3032_s17 = int_to_ptr.vmem [resolvable:$false] %s3031_s17 }
 0x40b   : > { %s3033_s25 = scalar_lea.vmem %s3032_s17, 32 }
 0x40e   : > { %2019 = vrot.lane.b32.xlu0 %v2018_v42, %s3114_s18  ;;  %2004 = vrot.lane.b32.xlu1 %v1993_v33, %s3115_s28  ;;  %v2065_v42 = vld [vmem:[%s4438_s5 + $0x118] sm:$0xff]  ;;  %s324_s18 = scalar_lea.vmem [#allocation5], %s323_s22 }
 0x40f   : > { %v2907_v43 = vpack.c.bf16 %v2065_v42, %v2064_v41  ;;  %s2343_s28 = sshll.u32 %s324_s18, 4  ;;  %s4392_s28 = int_to_ptr.vmem [resolvable:$true] %s2343_s28 }
 0x410   : > { %s3027_s29 = scalar_lea.vmem %s4392_s28, 16  ;;  %p3034_p0 = scmp.lt.s32.totalorder %s4392_s28, %s3032_s17 }
 0x411   : > { %p3028_p11 = scmp.ne.s32.totalorder %s4392_s28, %s3027_s29  ;;  %p3035_p1 = scmp.lt.s32.totalorder %s3033_s25, %s3027_s29 }
 0x412   : > { %2011 = vrot.lane.b32.xlu0 %v1993_v33, %s3117_s27 }
 0x413   : > { %p3029_p12 = pnand %p3028_p11, %p3208_p5  ;;  %p3036_p2 = por %p3035_p1, %p3034_p0 }
 0x415   : > { %p3030_p13 = pneg %p3029_p12 }
 0x417   : > { %p3037_p3 = pnand %p3036_p2, %p3030_p13 }
 0x468   : > { %v1841_v45 = vpop.permute.xlu1 %1840  ;;  %v1848_v46 = vpop.permute.xlu0 %1847 }
 0x469   : > { %1846 = vst.msk [vmem:[#allocation4] sm:$0x1] %vm1845_vm9, %v1841_v45  ;;  %vm4188_vm9 = vcmp.lt.s32.totalorder %v910_v22, 32 }
 0x46a   : > { %1853 = vst.msk [vmem:[#allocation4] sm:$0x1] %vm1852_vm10, %v1848_v46  ;;  %vm1909_vm10 = vmand %vm4155_vm0, %vm4160_vm1  ;;  %v2068_v46 = vld [vmem:[%s4438_s5 + $0x130] sm:$0xff] }
 0x46b   : > { %vm4504_vm1 = vmand %vm4169_vm3, %vm4174_vm5  ;;  %vm1997_vm3 = vcmask 916480   ;;  %vm4280_vm5 = vcmp.ge.s32.totalorder %v910_v22, 4 }
 0x46c   : > { %v1912_v47 = vpop.permute.xlu1 %1911  ;;  %v1898_v48 = vpop.permute.xlu0 %1897  ;;  %vm1966_vm0 = vmand %vm4226_vm14, %vm4231_vm13  ;;  %v4510_v24 = vsel %vm4280_vm5, 4294967295, %v4509_v24 }
 0x46d   : > { %v1913_v63 = vrot.slane %v1912_v47, 7 }
 0x46f   : > { %v1915_v14 = vsel %vm1914_vm6, %v1913_v63, %v1912_v47  ;;  %vm4503_vm6 = vcmask 162816   ;;  %v2069_v47 = vld [vmem:[%s4438_s5 + $0x138] sm:$0xff]  ;;  %v2070_v63 = vld [vmem:[%s4439_s6] sm:$0x1] }
 0x470   : > { %v1948_v49 = vpop.permute.xlu1 %1947  ;;  %v1905_v50 = vpop.permute.xlu0 %1904 }
 0x474   : > { %v1923_v56 = vpop.permute.xlu1 %1922  ;;  %v1888_v59 = vpop.permute.xlu0 %1887 }
 0x475   : > { %v1889_v60 = vrot.slane %v1888_v59, 1  ;;  %v1924_v2 = vrot.slane %v1923_v56, 1 }
 0x477   : > { %v1890_v3 = vsel %vm1203_vm15, %v1888_v59, %v1889_v60  ;;  %vm4217_vm15 = vcmp.lt.s32.totalorder %v910_v22, 72  ;;  %v1926_v17 = vsel %vm4503_vm6, %v1923_v56, %v1924_v2  ;;  %vm1986_vm6 = vcmask 818176   ;;  %v2236_v60 = vld [vmem:[%s4440_s7 + $0x30] sm:$0x3] }
 0x478   : > { %1895 = vst.msk [vmem:[#allocation4] sm:$0x1] %vm1894_vm2, %v1890_v3  ;;  %v1955_v9 = vpop.permute.xlu1 %1954  ;;  %v1984_v11 = vpop.permute.xlu0 %1983  ;;  %vm1930_vm2 = vmand %vm4183_vm8, %vm4188_vm9  ;;  %vm4246_vm8 = vcmp.ge.s32.totalorder %v910_v22, 92  ;;  %vm4251_vm9 = vcmp.lt.s32.totalorder %v910_v22, 112  ;;  %v2922_v59 = vpack.c.bf16 %v2235_v58, %v2234_v57 }
 0x479   : > { %1903 = vst.msk [vmem:[#allocation4] sm:$0x1] %vm1902_vm7, %v1898_v48  ;;  %v1985_v18 = vrot.slane %v1984_v11, 1  ;;  %vm4271_vm7 = vcmp.lt.s32.totalorder %v910_v22, 132  ;;  %vm1991_vm13 = vmand %vm4246_vm8, %vm4251_vm9  ;;  %vm4312_vm8 = vcmp.ge.s32.totalorder %v910_v22, 24  ;;  %vm2022_vm9 = vcmask 424960  }
 0x47a   : > { %1910 = vst.msk [vmem:[#allocation4] sm:$0x1] %vm1909_vm10, %v1905_v50  ;;  %vm4266_vm10 = vcmp.ge.s32.totalorder %v910_v22, 112  ;;  %vm4514_vm14 = vmand %vm4212_vm4, %vm4217_vm15  ;;  %vm2015_vm4 = vcmp.lt.s32.totalorder %v910_v22, 44  ;;  %vm2025_vm15 = vcmp.ge.s32.totalorder %v910_v22, 44  ;;  %v2913_v48 = vpack.c.bf16 %v2069_v47, %v2068_v46 }
 0x47b   : > { %1920 = vst.msk [vmem:[#allocation4] sm:$0x3] %vm4504_vm1, %v1915_v14  ;;  %vm4285_vm1 = vcmp.lt.s32.totalorder %v910_v22, 24  ;;  %vm2002_vm5 = vmand %vm4266_vm10, %vm4271_vm7  ;;  %v1987_v27 = vsel %vm1986_vm6, %v1984_v11, %v1985_v18  ;;  %vm2026_vm7 = vcmp.lt.s32.totalorder %v910_v22, 64  ;;  %v2063_v22 = vld [vmem:[%s4438_s5 + $0x108] sm:$0xff]  ;;  %vm4518_vm6 = vmmov 0  }
 0x47c   : > { %1931 = vst.msk [vmem:[#allocation4 + $0x1] sm:$0x1] %vm1930_vm2, %v1926_v17  ;;  %v1962_v20 = vpop.permute.xlu1 %1961  ;;  %v1995_v12 = vpop.permute.xlu0 %1994  ;;  %vm4513_vm2 = vmand %vm4198_vm11, %vm4203_vm12  ;;  %vm4515_vm11 = vnez %v4510_v24  ;;  %v2904_v40 = vpack.c.bf16 %v2063_v22, %v2062_v36 }
 0x47d   : > { %1953 = vst.msk [vmem:[#allocation4 + $0x1] sm:$0x1] %vm4513_vm2, %v1948_v49  ;;  %v1996_v26 = vrot.slane %v1995_v12, 7  ;;  %vm2009_vm12 = vmand %vm4515_vm11, %vm4285_vm1  ;;  %v2082_v49 = vsub.s32 2, %v3440_v23  ;;  %v2233_v23 = vld [vmem:[%s4440_s7 + $0x18] sm:$0xff]  ;;  %vm2238_vm1 = vcmask 408576  }
 0x47e   : > { %1960 = vst.msk [vmem:[#allocation4 + $0x1] sm:$0x1] %vm4514_vm14, %v1955_v9  ;;  %vm2027_vm10 = vmand %vm2025_vm15, %vm2026_vm7  ;;  %v2919_v56 = vpack.c.bf16 %v2233_v23, %v2232_v54  ;;  %vm2316_vm2 = vcmask 73728  }
 0x47f   : > { %1967 = vst.msk [vmem:[#allocation4 + $0x1] sm:$0x1] %vm1966_vm0, %v1962_v20  ;;  %v1998_v28 = vsel %vm1997_vm3, %v1996_v26, %v1995_v12  ;;  %vm2016_vm0 = vmand %vm4312_vm8, %vm2015_vm4  ;;  %vm2086_vm3 = vcmask 523264  }
 0x480   : > { %1992 = vst.msk [vmem:[#allocation4 + $0x1] sm:$0x1] %vm1991_vm13, %v1987_v27  ;;  %v2005_v30 = vpop.permute.xlu1 %2004  ;;  %v2020_v32 = vpop.permute.xlu0 %2019  ;;  %2920 = vmatpush3.bf16.msra.mxu1 %v2919_v56 }
 0x481   : > { %2003 = vst.msk [vmem:[#allocation4 + $0x1] sm:$0x3] %vm2002_vm5, %v1998_v28  ;;  %v2021_v51 = vrot.slane %v2020_v32, 1  ;;  %2921 = vmatprep.subr.bf16.mxu1 %v3116_v44  ;;  %vm2242_vm5 = vcmask 1041408  }
 0x482   : > { %2010 = vst.msk [vmem:[#allocation4 + $0x2] sm:$0x1] %vm2009_vm12, %v2005_v30 }
 0x483   : > { %v2023_v33 = vsel %vm2022_vm9, %v2020_v32, %v2021_v51 }
 0x484   : > { %v2012_v10 = vpop.permute.xlu0 %2011  ;;  %2923 = vmatpush3.bf16.msra.mxu1 %v2922_v59 }
 0x485   : > { %2017 = vst.msk [vmem:[#allocation4 + $0x2] sm:$0x1] %vm2016_vm0, %v2012_v10  ;;  %2676 = vmatprep.subr.mxu1 %v3091_v7 }
 0x486   : > { %2028 = vst.msk [vmem:[#allocation4 + $0x2] sm:$0x1] %vm2027_vm10, %v2023_v33 }
 0x488   : > { %2677 = vmatpush3.msk.msra.mxu1 %vm2242_vm5, %v2236_v60 }
 0x48d   : > { %v2029_v37 = vld [vmem:[#allocation4] sm:$0x7] }
 0x48e   : > { %v2079_v38 = vrot.slane %v2029_v37, %v3449_v35  ;;  %v2075_v39 = vrot.slane %v2029_v37, %v3443_v34  ;;  %v2066_v34 = vld [vmem:[%s4438_s5 + $0x120] sm:$0xff]  ;;  %v2067_v35 = vld [vmem:[%s4438_s5 + $0x128] sm:$0xff]  ;;  %v2083_v50 = vrot.slane %v2029_v37, %v2082_v49 }
 0x48f   : > { %v2910_v45 = vpack.c.bf16 %v2067_v35, %v2066_v34 }
 0x490   : > { %2153 = vmatprep.mubr.f32.mxu0 %v2079_v38 }
 0x491   : > { %2154 = vmatmul.mubr.f32.vlgmr.msra.gmra.mrb[8].mxu0 %v2075_v39 }
 0x492   : > { %2905 = vmatpush3.bf16.msra.mxu0 %v2904_v40  ;;  %2661 = vmatprep.mubr.msk.f32.mxu0 %vm4518_vm6, %v3091_v7  ;;  %v2237_v7 = vld [vmem:[%s4441_s8] sm:$0x1] }
 0x493   : > { %2906 = vmatprep.subr.bf16.mxu0 %v3116_v44 }
 0x496   : > { %2908 = vmatpush3.bf16.msra.mxu0 %v2907_v43 }
 0x497   : > { %2909 = vmatprep.subr.bf16.mxu0 %v3116_v44 }
 0x49a   : > { %2911 = vmatpush3.bf16.msra.mxu0 %v2910_v45 }
 0x49b   : > { %2912 = vmatprep.subr.bf16.mxu0 %v3116_v44 }
 0x49e   : > { %2914 = vmatpush3.bf16.msra.mxu0 %v2913_v48 }
 0x4a1   : > { %2662 = vmatmul.mubr.msk.f32.vlgmr.msra.gmra.mrb[10].mxu0 %vm2086_vm3, %v2083_v50 }
 0x564   : > { %v2625_v61 = vpop.f32.mrb[8].mxu0 }
 0x565   : > { %v2626_v44 = vpop.f32.mrb[9].mxu0 }
 0x566   : > { %v2627_v62 = vadd.f32 %v2626_v44, %v2625_v61 }
 0x568   : > { %v2156_v0 = vadd.f32 %v2627_v62, %v2070_v63 }
 0x574   : > { %v2225_v1 = vpop.f32.mrb[10].mxu0 }
 0x575   : > { %v2226_v2 = vadd.f32 %v2225_v1, %v2156_v0  ;;  %v2663_v3 = vpop.f32.mrb[11].mxu0 }
 0x577   : > { %v2229_v4 = vmax.f32 %v2226_v2, 0.0 }
 0x579   : > { %2679 = vmatmul.mubr.msk.f32.vlgmr.msra.gmra.mrb[2].mxu1 %vm2238_vm1, %v2229_v4 }
 0x64c   : > { %v2312_v5 = vpop.f32.mrb[2].mxu1 }
 0x64d   : > { %v2313_v6 = vadd.f32 %v2312_v5, %v2237_v7  ;;  %v2680_v8 = vpop.f32.mrb[3].mxu1 }
 0x64f   : > { %v2317_v9 = vsel %vm2316_vm2, %v2313_v6, -inf }
 0x650   : > { %2318 = vmax.xlane.f32.xlu1 %v2317_v9 }
 0x6dd   : > { %v2319_v11 = vpop.xlane.xlu1 %2318 }
 0x6de   : > { %v2320_v21 = vsub.f32 %v2313_v6, %v2319_v11 }
 0x6e0   : > { %v2321_v13 = vmul.f32 1.442695, %v2320_v21 }
 0x6e2   : > { %3023 = vpow2.f32 %v2321_v13 }
 0x6ec   : > { %v3024_v14 = vpop.eup %3023 }
 0x6ed   : > { %v2323_v15 = vsel %vm2316_vm2, %v3024_v14, 0.0 }
 0x6ee   : > { %2324 = vadd.xlane.f32.xlu0 %v2323_v15 }
 0x77b   : > { %v2325_v16 = vpop.xlane.xlu0 %2324 }
 0x77c   : > { %3025 = vlog2.f32 %v2325_v16 }
 0x786   : > { %v3026_v17 = vpop.eup %3025 }
 0x787   : > { %v2327_v18 = vmul.f32 0.6931472, %v3026_v17 }
 0x789   : > { %v2328_v19 = vsub.f32 %v2320_v21, %v2327_v18 }
 0x78b   : > { %2329 = vst.msk [vmem:[%s324_s18] sm:$0x1] %vm2316_vm2, %v2328_v19 }
 0x78c   : > { %3040 = shalt.err (!%p3037_p3)
}
 0x78d   : > { %s3041_s21 = scalar_lea.hbm %s4390_s14, 16  ;;  %s3045_s23 = scalar_lea.hbm %s4442_s9, 32 }
 0x78e   : > { %p3042_p4 = scmp.ne.s32.totalorder %s4390_s14, %s3041_s21  ;;  %p3046_p9 = scmp.lt.u32.totalorder %s4390_s14, %s4442_s9 }
 0x78f   : > { %p3047_p10 = scmp.lt.u32.totalorder %s3045_s23, %s3041_s21  ;;  %p3049_p12 = scmp.lt.u32.totalorder %s3041_s21, %s4390_s14 }
 0x790   : > { %p3043_p7 = pnand %p3042_p4, %p3208_p5 }
 0x791   : > { %p3048_p11 = por %p3047_p10, %p3046_p9 }
 0x792   : > { %p3044_p8 = pneg %p3043_p7 }
 0x793   : > { %p3050_p13 = por %p3049_p12, %p3048_p11 }
 0x795   : > { %p3051_p0 = pnand %p3050_p13, %p3044_p8 }
 0x797   : > { %3054 = shalt.err (!%p3051_p0)
}
 0x798   : > { %2956 = dma.vmem_to_hbm [thread:$0]  (%p3208_p5), %s4392_s28, 16, %s4390_s14, %s2331_s16  }
 0x799 PF: > { %p2962_p1 = scmp.ge.s32.totalorder %s3089_s12, 2  ;;  %s2355_s24 = sand.u32 1, %s3077_s30  }
 0x79a   : > { %s2356_s29 = scalar_lea.sflag [#allocation6], %s2355_s24 }
 0x79b   : > { %p2959_p2 = pnand %p2962_p1, %p3212_p6 }
 0x79d   : > { %3072 = dma.done.wait (!%p2959_p2), %s2356_s29, 16  }
 0x79e   : > { %3074 = vsyncadd (!%p2959_p2), %s2356_s29, 4294967280  ;;  %s4519_s13 = sld [smem:[#allocation8_spill]]  ;;  %p19_p3 = scmp.ge.s32.totalorder %s3195_s15, 4  }
 0x79f   : > { %s4520_s30 = smov %s3081_s10  ;;  %s4521_s10 = smov %s3085_s11 }
 0x7a0   : > { %s4523_s12 = smov %s3195_s15  ;;  %21 = sbr.rel (!%p19_p3) target bundleno = 3 (0x3), region = 110 }
 0x7a4   : > { %s4522_s11 = smov %s4519_s13 }
 0x7a7   :  { %2360 = vsyncpa [#allocation6], 1 }
 0x7a8   :  { %2362 = vsyncpa [#allocation6 + $0x1], 1 }

</bundles_post_ra>
